<compile_context>
chip_gen: v7x
topology: tpu7x:2x2x1
jax: 0.10.0
libtpu: 0.0.40
codegen_flags: <defaults>
</compile_context>

<pallas_src>
import functools

import jax
import jax.numpy as jnp
from jax import lax
from jax.experimental import pallas as pl
from jax.experimental.pallas import tpu as pltpu


# ----------------------------------------------------------------------------
# Helpers
# ----------------------------------------------------------------------------
def _round_up(n, m):
    return ((n + m - 1) // m) * m


def _largest_divisor_leq(n, target):
    """Largest divisor of n that is <= target (always >= 1; never returns > target)."""
    target = max(1, min(n, target))
    for t in range(target, 0, -1):
        if n % t == 0:
            return t
    return 1


def _vmem_budget_bytes():
    """(tile budget, vmem_limit_bytes) derived from the chip's physical VMEM."""
    try:
        cap = int(pltpu.get_tpu_info().vmem_capacity_bytes)
    except Exception:
        cap = 64 * 1024 * 1024           # conservative fallback (v7x per-TC size)
    budget = int(cap * 0.70)             # headroom for Mosaic internal scratch
    limit = min(cap, budget + (16 << 20))
    return budget, limit


def _derive_time_tile(T, P, Dp, B, H, out_bytes, budget):
    """Largest time tile Tt (divisor of T) whose VMEM working set fits `budget`."""
    per_t = B * (2 * P * Dp * 2          # x block, bf16, double-buffered
                 + 2 * H * out_bytes     # out block, double-buffered
                 + 4 * H * 4)            # gx scratch, f32 (single-buffered)
    resident = (2 * P * Dp * 4 * H * 2   # W_ih bf16 (counted double-buffered)
                + 2 * H * 4 * H * 2      # W_hh bf16
                + 2 * 4 * H * 4          # bias f32
                + 2 * B * H * 4          # h/c carry scratch
                + 4 * B * H * 4)         # hN/cN output blocks
    avail = max(budget - resident, per_t)
    tt_cap = min(max(1, avail // per_t), T, 256)
    return _largest_divisor_leq(T, tt_cap)


# ----------------------------------------------------------------------------
# Kernel: one bidirectional LSTM layer (fused input projection + recurrence)
# ----------------------------------------------------------------------------
def _bilstm_layer_kernel(x_ref, wih_ref, whh_ref, b_ref,
                         out_ref, hN_ref, cN_ref,
                         gx_sc, h_sc, c_sc,
                         *, hidden, tile_t, batch, n_parts, part_dim):
    """One (direction, time-tile) grid step.

    x_ref   : (P, Tt*B, Dp) bf16  layer-input tile (bwd direction sees time-reversed
                                   block order via the index_map)
    wih_ref : (P*Dp, 4H) bf16     input->gate weights for this direction
    whh_ref : (H, 4H)    bf16     hidden->gate weights for this direction
    b_ref   : (1, 4H)    f32      folded b_ih + b_hh for this direction
    out_ref : (Tt*B, H)           layer output tile (bf16 inner layers, f32 last)
    hN_ref / cN_ref : (B, H) f32  final states (written on the last tile only)
    gx_sc   : (Tt*B, 4H) f32 scratch; h_sc / c_sc : (B, H) f32 carries
    """
    d = pl.program_id(0)                 # 0 = forward, 1 = backward (time reversed)
    t_blk = pl.program_id(1)
    H, Tt, B, P, Dp = hidden, tile_t, batch, n_parts, part_dim

    @pl.when(t_blk == 0)
    def _():
        h_sc[...] = jnp.zeros_like(h_sc)
        c_sc[...] = jnp.zeros_like(c_sc)

    # ---- Prologue: hoisted input projection for the whole time tile.
    # One MXU matmul with M = Tt*B per input part amortises the W_ih weight pushes;
    # the gate pre-activations live only in VMEM scratch (no HBM round-trip).
    acc = jnp.zeros((Tt * B, 4 * H), jnp.float32)
    for p in range(P):                                   # static unroll over parts
        acc = acc + jnp.dot(x_ref[p], wih_ref[p * Dp:(p + 1) * Dp, :],
                            preferred_element_type=jnp.float32)
    gx_sc[...] = acc + b_ref[...]

    whh = whh_ref[...]                                   # (H, 4H) bf16, resident

    # ---- Recurrence over the tile (fwd walks 0..Tt-1, bwd walks Tt-1..0).
    # TODO(synk): with H % 128 != 0 the gate slices below are sub-lane-width; pad H
    #             to a multiple of 128 at realistic model sizes for lane-dense vregs.
    def step(s, carry):
        lt = s + d * (Tt - 1 - 2 * s)                    # fwd: s ; bwd: Tt-1-s
        row = pl.multiple_of(lt * B, B)
        gates = gx_sc[pl.ds(row, B), :] + jnp.dot(
            h_sc[...].astype(jnp.bfloat16), whh,
            preferred_element_type=jnp.float32)          # (B, 4H)
        i = jax.nn.sigmoid(gates[:, 0 * H:1 * H])
        f = jax.nn.sigmoid(gates[:, 1 * H:2 * H])
        g = jnp.tanh(gates[:, 2 * H:3 * H])
        o = jax.nn.sigmoid(gates[:, 3 * H:4 * H])
        c = f * c_sc[...] + i * g
        h = o * jnp.tanh(c)
        c_sc[...] = c
        h_sc[...] = h
        out_ref[pl.ds(row, B), :] = h.astype(out_ref.dtype)
        return carry

    lax.fori_loop(0, Tt, step, 0, unroll=(True if Tt <= 8 else 8))

    # Only the last time tile's carry is the final (h, c): skip redundant stores.
    @pl.when(t_blk == pl.num_programs(1) - 1)
    def _():
        hN_ref[...] = h_sc[...]
        cN_ref[...] = c_sc[...]


def run_bilstm_layer(x_parts, wih, whh, b, *, seq_len, batch, out_2h, out_dtype,
                     vmem_budget, vmem_limit):
    """x_parts: (P, T*B, Dp) bf16 (rows merged time-major).

    Returns (out, hN, cN); out is (T*B, 2H) when out_2h else (2, T*B, H)."""
    P, R, Dp = x_parts.shape
    T, B = seq_len, batch
    assert R == T * B
    H = whh.shape[1]
    G = 4 * H
    out_bytes = jnp.dtype(out_dtype).itemsize
    Tt = _derive_time_tile(T, P, Dp, B, H, out_bytes, vmem_budget)
    nT = T // Tt

    def t_map(d, t):                     # backward direction walks blocks in reverse
        return t + d * (nT - 1 - 2 * t)

    kernel = functools.partial(_bilstm_layer_kernel, hidden=H, tile_t=Tt,
                               batch=B, n_parts=P, part_dim=Dp)

    if out_2h:
        # Direct lane-dense write into the (R, 2H) buffer: feature-block offset = d.
        out_shape0 = jax.ShapeDtypeStruct((R, 2 * H), out_dtype)
        out_spec0 = pl.BlockSpec((Tt * B, H), lambda d, t: (t_map(d, t), d))
    else:
        # Fallback for H % 128 != 0: keep the two directions stacked (no concat
        # between layers; one concat only for the final encoder_states).
        out_shape0 = jax.ShapeDtypeStruct((2, R, H), out_dtype)
        out_spec0 = pl.BlockSpec((None, Tt * B, H), lambda d, t: (d, t_map(d, t), 0))

    out, hN, cN = pl.pallas_call(
        kernel,
        out_shape=(out_shape0,
                   jax.ShapeDtypeStruct((2, B, H), jnp.float32),
                   jax.ShapeDtypeStruct((2, B, H), jnp.float32)),
        grid_spec=pltpu.PrefetchScalarGridSpec(
            num_scalar_prefetch=0,
            grid=(2, nT),
            in_specs=[
                pl.BlockSpec((P, Tt * B, Dp), lambda d, t: (0, t_map(d, t), 0)),
                pl.BlockSpec((None, P * Dp, G), lambda d, t: (d, 0, 0)),
                pl.BlockSpec((None, H, G), lambda d, t: (d, 0, 0)),
                pl.BlockSpec((None, 1, G), lambda d, t: (d, 0, 0)),
            ],
            out_specs=[
                out_spec0,
                pl.BlockSpec((None, B, H), lambda d, t: (d, 0, 0)),
                pl.BlockSpec((None, B, H), lambda d, t: (d, 0, 0)),
            ],
            scratch_shapes=[
                pltpu.VMEM((Tt * B, G), jnp.float32),   # gate pre-activations
                pltpu.VMEM((B, H), jnp.float32),        # h carry
                pltpu.VMEM((B, H), jnp.float32),        # c carry
            ],
        ),
        compiler_params=pltpu.CompilerParams(
            dimension_semantics=("parallel", "arbitrary"),
            vmem_limit_bytes=vmem_limit),
    )(x_parts, wih, whh, b)
    return out, hN, cN


# ----------------------------------------------------------------------------
# Kernel: fused fc_hidden / fc_cell projections (single launch, all-VMEM)
# ----------------------------------------------------------------------------
def _final_fc_kernel(hN_ref, cN_ref, wh_ref, bh_ref, wc_ref, bc_ref,
                     hid_ref, cell_ref, *, hidden):
    H = hidden

    def proj(state_ref, w_ref, b_ref):
        fwd = state_ref[0].astype(jnp.bfloat16)          # (B, H)
        bwd = state_ref[1].astype(jnp.bfloat16)          # (B, H)
        return (jnp.dot(fwd, w_ref[0:H, :], preferred_element_type=jnp.float32)
                + jnp.dot(bwd, w_ref[H:2 * H, :], preferred_element_type=jnp.float32)
                + b_ref[...])

    hid_ref[...] = proj(hN_ref, wh_ref, bh_ref)
    cell_ref[...] = proj(cN_ref, wc_ref, bc_ref)


def run_final_fc(hN, cN, wh, bh, wc, bc):
    _, B, H = hN.shape
    kernel = functools.partial(_final_fc_kernel, hidden=H)
    vspec = pl.BlockSpec(memory_space=pltpu.MemorySpace.VMEM)
    return pl.pallas_call(
        kernel,
        out_shape=(jax.ShapeDtypeStruct((B, H), jnp.float32),
                   jax.ShapeDtypeStruct((B, H), jnp.float32)),
        in_specs=[vspec] * 6,
        out_specs=(vspec, vspec),
    )(hN, cN, wh, bh, wc, bc)


# ----------------------------------------------------------------------------
# Encoder forward (eval mode)
# ----------------------------------------------------------------------------
def encoder_forward(tokens, params):
    T, B = tokens.shape
    H = params["lstm"][0]["whh"].shape[1]
    Bp = _round_up(B, 8)                      # sublane alignment for the recurrence
    vmem_budget, vmem_limit = _vmem_budget_bytes()
    # Direct (R, 2H) layer outputs need lane-aligned halves (H % 128 == 0); otherwise
    # fall back to the stacked (2, R, H) form.
    out_2h = (H % 128 == 0)

    emb = jnp.take(params["embedding"], tokens, axis=0).astype(jnp.bfloat16)  # (T,B,E)
    if Bp != B:
        emb = jnp.pad(emb, ((0, 0), (0, Bp - B), (0, 0)))
    # self.dropout in eval mode == identity.
    # TODO(synk): training-mode (stochastic) dropout is not implemented.
    x_parts = emb.reshape(1, T * Bp, -1)      # (1, R, E) rows merged time-major

    num_layers = len(params["lstm"])
    h0 = c0 = out = None
    for l, lp in enumerate(params["lstm"]):
        last = (l == num_layers - 1)
        out_dtype = jnp.float32 if last else jnp.bfloat16   # bf16 inter-layer acts
        out, hN, cN = run_bilstm_layer(
            x_parts, lp["wih"], lp["whh"], lp["b"],
            seq_len=T, batch=Bp, out_2h=out_2h, out_dtype=out_dtype,
            vmem_budget=vmem_budget, vmem_limit=vmem_limit)
        if l == 0:
            h0, c0 = hN, cN                 # == hidden[0:1] / hidden[1:2] of nn.LSTM
        x_parts = out[None] if out_2h else out

    if out_2h:
        encoder_states = out.reshape(T, Bp, 2 * H)
    else:
        encoder_states = jnp.concatenate([out[0], out[1]],
                                         axis=-1).reshape(T, Bp, 2 * H)

    hidden, cell = run_final_fc(h0, c0,
                                params["fc_hidden_w"], params["fc_hidden_b"],
                                params["fc_cell_w"], params["fc_cell_b"])
    return (encoder_states[:, :B],
            hidden[:B].reshape(1, B, H),
            cell[:B].reshape(1, B, H))


# ----------------------------------------------------------------------------
# Pure-JAX reference (same bf16-operand / f32-accumulate math)
# ----------------------------------------------------------------------------
def _lstm_dir_ref(x_parts, wih, whh, b, reverse):
    P, T, B, Dp = x_parts.shape
    H = whh.shape[0]
    gx = jnp.zeros((T * B, 4 * H), jnp.float32)
    for p in range(P):
        gx = gx + jnp.dot(x_parts[p].reshape(T * B, Dp).astype(jnp.bfloat16),
                          wih[p * Dp:(p + 1) * Dp],
                          preferred_element_type=jnp.float32)
    gx = gx.reshape(T, B, 4 * H) + b[0]

    def step(carry, gx_t):
        h, c = carry
        gates = gx_t + jnp.dot(h.astype(jnp.bfloat16), whh,
                               preferred_element_type=jnp.float32)
        i = jax.nn.sigmoid(gates[:, 0 * H:1 * H])
        f = jax.nn.sigmoid(gates[:, 1 * H:2 * H])
        g = jnp.tanh(gates[:, 2 * H:3 * H])
        o = jax.nn.sigmoid(gates[:, 3 * H:4 * H])
        c = f * c + i * g
        h = o * jnp.tanh(c)
        return (h, c), h

    zeros = jnp.zeros((B, H), jnp.float32)
    (h, c), hs = lax.scan(step, (zeros, zeros), gx, reverse=reverse)
    return hs, h, c


def encoder_forward_ref(tokens, params):
    T, B = tokens.shape
    H = params["lstm"][0]["whh"].shape[1]
    out_2h = (H % 128 == 0)
    emb = jnp.take(params["embedding"], tokens, axis=0).astype(jnp.bfloat16)
    x_parts = emb[None]                                   # (1, T, B, E)
    num_layers = len(params["lstm"])
    h0 = c0 = None
    enc = None
    for l, lp in enumerate(params["lstm"]):
        last = (l == num_layers - 1)
        out_dtype = jnp.float32 if last else jnp.bfloat16
        hs_list, fh, fc_ = [], [], []
        for d in range(2):
            hs, h, c = _lstm_dir_ref(x_parts, lp["wih"][d], lp["whh"][d], lp["b"][d],
                                     reverse=(d == 1))
            hs_list.append(hs.astype(out_dtype))
            fh.append(h)
            fc_.append(c)
        if l == 0:
            h0, c0 = jnp.stack(fh), jnp.stack(fc_)
        if out_2h:
            full = jnp.concatenate(hs_list, axis=-1)      # (T, B, 2H)
            x_parts = full[None]
            if last:
                enc = full.astype(jnp.float32)
        else:
            x_parts = jnp.stack(hs_list)                  # (2, T, B, H)
            if last:
                enc = jnp.concatenate([x_parts[0], x_parts[1]],
                                      axis=-1).astype(jnp.float32)

    def proj(state, w, bvec):
        return (jnp.dot(state[0].astype(jnp.bfloat16), w[0:H],
                        preferred_element_type=jnp.float32)
                + jnp.dot(state[1].astype(jnp.bfloat16), w[H:2 * H],
                          preferred_element_type=jnp.float32)
                + bvec)

    hidden = proj(h0, params["fc_hidden_w"], params["fc_hidden_b"]).reshape(1, B, H)
    cell = proj(c0, params["fc_cell_w"], params["fc_cell_b"]).reshape(1, B, H)
    return enc, hidden, cell


# ----------------------------------------------------------------------------
# Deterministic parameter init
# ----------------------------------------------------------------------------
def init_params(key, input_size, embedding_size, hidden_size, num_layers):
    E, H = embedding_size, hidden_size
    scale = float(H) ** -0.5
    keys = iter(jax.random.split(key, 1 + 3 * num_layers + 4))

    def u(shape):
        return jax.random.uniform(next(keys), shape, jnp.float32, -scale, scale)

    params = {"embedding": jax.random.normal(next(keys), (input_size, E), jnp.float32)}
    layers = []
    for l in range(num_layers):
        in_dim = E if l == 0 else 2 * H
        layers.append({
            "wih": u((2, in_dim, 4 * H)).astype(jnp.bfloat16),   # gate order i,f,g,o
            "whh": u((2, H, 4 * H)).astype(jnp.bfloat16),
            "b": u((2, 1, 4 * H)),                               # f32, b_ih+b_hh folded
        })
    params["lstm"] = layers
    params["fc_hidden_w"] = u((2 * H, H)).astype(jnp.bfloat16)
    params["fc_hidden_b"] = u((1, H))
    params["fc_cell_w"] = u((2 * H, H)).astype(jnp.bfloat16)
    params["fc_cell_b"] = u((1, H))
    return params


if __name__ == "__main__":
    # small shapes: vocab=50, embed=16, hidden=32, layers=2, seq=8, batch=2
    INPUT_SIZE, EMBED, HIDDEN, NUM_LAYERS = 50, 16, 32, 2
    T, B = 8, 2

    key = jax.random.PRNGKey(0)
    pkey, tkey = jax.random.split(key)
    params = init_params(pkey, INPUT_SIZE, EMBED, HIDDEN, NUM_LAYERS)
    tokens = jax.random.randint(tkey, (T, B), 0, INPUT_SIZE, dtype=jnp.int32)

    enc_states, hidden, cell = jax.block_until_ready(encoder_forward(tokens, params))
    assert enc_states.shape == (T, B, 2 * HIDDEN)
    assert hidden.shape == (1, B, HIDDEN)
    assert cell.shape == (1, B, HIDDEN)

    # sanity check against the pure-JAX reference (same bf16/f32 math -> tight tol)
    ref_states, ref_hidden, ref_cell = jax.block_until_ready(
        encoder_forward_ref(tokens, params))
    assert jnp.max(jnp.abs(enc_states - ref_states)) < 2e-3
    assert jnp.max(jnp.abs(hidden - ref_hidden)) < 2e-3
    assert jnp.max(jnp.abs(cell - ref_cell)) < 2e-3

    print("KERNEL_OK")
</pallas_src>

<mosaic_0001>
module attributes {stable_mosaic.version = 11 : i64} {
  func.func @_bilstm_layer_kernel(%arg0: i32, %arg1: i32, %arg2: memref<1x64x16xbf16, #tpu.memory_space<vmem>>, %arg3: memref<1x16x128xbf16, #tpu.memory_space<vmem>>, %arg4: memref<1x32x128xbf16, #tpu.memory_space<vmem>>, %arg5: memref<1x1x128xf32, #tpu.memory_space<vmem>>, %arg6: memref<1x64x32xbf16, #tpu.memory_space<vmem>>, %arg7: memref<1x8x32xf32, #tpu.memory_space<vmem>>, %arg8: memref<1x8x32xf32, #tpu.memory_space<vmem>>, %arg9: memref<64x128xf32, #tpu.memory_space<vmem>>, %arg10: memref<8x32xf32, #tpu.memory_space<vmem>>, %arg11: memref<8x32xf32, #tpu.memory_space<vmem>>) attributes {dimension_semantics = [#tpu.dimension_semantics<parallel>, #tpu.dimension_semantics<arbitrary>], iteration_bounds = array<i64: 2, 1>, scalar_prefetch = 0 : i64, scratch_operands = 3 : i64, tpu.core_type = #tpu.core_type<tc>, window_params = [{transform_indices = @transform_0, window_bounds = array<i64: 1, 64, 16>}, {transform_indices = @transform_1, window_bounds = array<i64: 1, 16, 128>}, {transform_indices = @transform_2, window_bounds = array<i64: 1, 32, 128>}, {transform_indices = @transform_3, window_bounds = array<i64: 1, 1, 128>}, {transform_indices = @transform_4, window_bounds = array<i64: 1, 64, 32>}, {transform_indices = @transform_5, window_bounds = array<i64: 1, 8, 32>}, {transform_indices = @transform_6, window_bounds = array<i64: 1, 8, 32>}]} {
    %c0_i32 = arith.constant 0 : i32
    %0 = arith.cmpi eq, %arg1, %c0_i32 : i32
    %1 = arith.extui %0 : i1 to i32
    %c0_i32_0 = arith.constant 0 : i32
    %2 = arith.cmpi ne, %1, %c0_i32_0 : i32
    scf.if %2 {
      %cst_162 = arith.constant 0.000000e+00 : f32
      %380 = vector.broadcast %cst_162 : f32 to vector<8x32xf32>
      %c0_163 = arith.constant 0 : index
      %c0_164 = arith.constant 0 : index
      %381 = vector.load %arg10[%c0_163, %c0_164] : memref<8x32xf32, #tpu.memory_space<vmem>>, vector<8x32xf32>
      tpu.vector_store %arg10[%c0_163, %c0_164], %380 {strides = array<i32>} : memref<8x32xf32, #tpu.memory_space<vmem>>, vector<8x32xf32>,
      %cst_165 = arith.constant 0.000000e+00 : f32
      %382 = vector.broadcast %cst_165 : f32 to vector<8x32xf32>
      %c0_166 = arith.constant 0 : index
      %c0_167 = arith.constant 0 : index
      %383 = vector.load %arg11[%c0_166, %c0_167] : memref<8x32xf32, #tpu.memory_space<vmem>>, vector<8x32xf32>
      tpu.vector_store %arg11[%c0_166, %c0_167], %382 {strides = array<i32>} : memref<8x32xf32, #tpu.memory_space<vmem>>, vector<8x32xf32>,
    } else {
    }
    %cst = arith.constant 0.000000e+00 : f32
    %3 = vector.broadcast %cst : f32 to vector<64x128xf32>
    %c0 = arith.constant 0 : index
    %c0_1 = arith.constant 0 : index
    %c0_2 = arith.constant 0 : index
    %4 = vector.load %arg2[%c0, %c0_1, %c0_2] : memref<1x64x16xbf16, #tpu.memory_space<vmem>>, vector<1x64x16xbf16>
    %5 = vector.shape_cast %4 : vector<1x64x16xbf16> to vector<64x16xbf16>
    %c0_3 = arith.constant 0 : index
    %c0_4 = arith.constant 0 : index
    %c0_5 = arith.constant 0 : index
    %6 = vector.load %arg3[%c0_3, %c0_4, %c0_5] : memref<1x16x128xbf16, #tpu.memory_space<vmem>>, vector<1x16x128xbf16>
    %7 = vector.shape_cast %6 : vector<1x16x128xbf16> to vector<16x128xbf16>
    %cst_6 = arith.constant dense<0.000000e+00> : vector<64x128xf32>
    %8 = tpu.matmul %5, %7, %cst_6 {dimension_numbers = #tpu.dot_dimension_numbers<[1], [0], [0], [1], [0, 0, 1, 1], [], []>} : vector<64x16xbf16>, vector<16x128xbf16>, vector<64x128xf32> -> vector<64x128xf32>
    %9 = arith.addf %3, %8 : vector<64x128xf32>
    %c0_7 = arith.constant 0 : index
    %c0_8 = arith.constant 0 : index
    %c0_9 = arith.constant 0 : index
    %10 = vector.load %arg5[%c0_7, %c0_8, %c0_9] : memref<1x1x128xf32, #tpu.memory_space<vmem>>, vector<1x1x128xf32>
    %11 = vector.shape_cast %10 : vector<1x1x128xf32> to vector<1x128xf32>
    %12 = vector.broadcast %11 : vector<1x128xf32> to vector<64x128xf32>
    %13 = arith.addf %9, %12 : vector<64x128xf32>
    %c0_10 = arith.constant 0 : index
    %c0_11 = arith.constant 0 : index
    %14 = vector.load %arg9[%c0_10, %c0_11] : memref<64x128xf32, #tpu.memory_space<vmem>>, vector<64x128xf32>
    tpu.vector_store %arg9[%c0_10, %c0_11], %13 {strides = array<i32>} : memref<64x128xf32, #tpu.memory_space<vmem>>, vector<64x128xf32>,
    %c0_12 = arith.constant 0 : index
    %c0_13 = arith.constant 0 : index
    %c0_14 = arith.constant 0 : index
    %15 = vector.load %arg4[%c0_12, %c0_13, %c0_14] : memref<1x32x128xbf16, #tpu.memory_space<vmem>>, vector<1x32x128xbf16>
    %16 = vector.shape_cast %15 : vector<1x32x128xbf16> to vector<32x128xbf16>
    %c0_i32_15 = arith.constant 0 : i32
    %c2_i32 = arith.constant 2 : i32
    %17 = arith.muli %c2_i32, %c0_i32_15 : i32
    %c7_i32 = arith.constant 7 : i32
    %18 = arith.subi %c7_i32, %17 : i32
    %19 = arith.muli %arg0, %18 : i32
    %20 = arith.addi %c0_i32_15, %19 : i32
    %c8_i32 = arith.constant 8 : i32
    %21 = arith.muli %20, %c8_i32 : i32
    %22 = tpu.assume_multiple %21, 8 : i32
    %23 = arith.index_cast %22 : i32 to index
    %c0_16 = arith.constant 0 : index
    %24 = vector.load %arg9[%23, %c0_16] : memref<64x128xf32, #tpu.memory_space<vmem>>, vector<8x128xf32>
    %c0_17 = arith.constant 0 : index
    %c0_18 = arith.constant 0 : index
    %25 = vector.load %arg10[%c0_17, %c0_18] : memref<8x32xf32, #tpu.memory_space<vmem>>, vector<8x32xf32>
    %26 = arith.truncf %25 : vector<8x32xf32> to vector<8x32xbf16>
    %cst_19 = arith.constant dense<0.000000e+00> : vector<8x128xf32>
    %27 = tpu.matmul %26, %16, %cst_19 {dimension_numbers = #tpu.dot_dimension_numbers<[1], [0], [0], [1], [0, 0, 1, 1], [], []>} : vector<8x32xbf16>, vector<32x128xbf16>, vector<8x128xf32> -> vector<8x128xf32>
    %28 = arith.addf %24, %27 : vector<8x128xf32>
    %29 = vector.extract_strided_slice %28 {offsets = [0, 0], sizes = [8, 32], strides = [1, 1]} : vector<8x128xf32> to vector<8x32xf32>
    %30 = arith.negf %29 : vector<8x32xf32>
    %31 = math.exp %30 : vector<8x32xf32>
    %cst_20 = arith.constant 1.000000e+00 : f32
    %32 = vector.broadcast %cst_20 : f32 to vector<8x32xf32>
    %33 = arith.addf %32, %31 : vector<8x32xf32>
    %34 = arith.divf %32, %33 : vector<8x32xf32>
    %35 = vector.extract_strided_slice %28 {offsets = [0, 32], sizes = [8, 32], strides = [1, 1]} : vector<8x128xf32> to vector<8x32xf32>
    %36 = arith.negf %35 : vector<8x32xf32>
    %37 = math.exp %36 : vector<8x32xf32>
    %cst_21 = arith.constant 1.000000e+00 : f32
    %38 = vector.broadcast %cst_21 : f32 to vector<8x32xf32>
    %39 = arith.addf %38, %37 : vector<8x32xf32>
    %40 = arith.divf %38, %39 : vector<8x32xf32>
    %41 = vector.extract_strided_slice %28 {offsets = [0, 64], sizes = [8, 32], strides = [1, 1]} : vector<8x128xf32> to vector<8x32xf32>
    %42 = math.tanh %41 : vector<8x32xf32>
    %43 = vector.extract_strided_slice %28 {offsets = [0, 96], sizes = [8, 32], strides = [1, 1]} : vector<8x128xf32> to vector<8x32xf32>
    %44 = arith.negf %43 : vector<8x32xf32>
    %45 = math.exp %44 : vector<8x32xf32>
    %cst_22 = arith.constant 1.000000e+00 : f32
    %46 = vector.broadcast %cst_22 : f32 to vector<8x32xf32>
    %47 = arith.addf %46, %45 : vector<8x32xf32>
    %48 = arith.divf %46, %47 : vector<8x32xf32>
    %c0_23 = arith.constant 0 : index
    %c0_24 = arith.constant 0 : index
    %49 = vector.load %arg11[%c0_23, %c0_24] : memref<8x32xf32, #tpu.memory_space<vmem>>, vector<8x32xf32>
    %50 = arith.mulf %40, %49 : vector<8x32xf32>
    %51 = arith.mulf %34, %42 : vector<8x32xf32>
    %52 = arith.addf %50, %51 : vector<8x32xf32>
    %53 = math.tanh %52 : vector<8x32xf32>
    %54 = arith.mulf %48, %53 : vector<8x32xf32>
    %c0_25 = arith.constant 0 : index
    %c0_26 = arith.constant 0 : index
    %55 = vector.load %arg11[%c0_25, %c0_26] : memref<8x32xf32, #tpu.memory_space<vmem>>, vector<8x32xf32>
    tpu.vector_store %arg11[%c0_25, %c0_26], %52 {strides = array<i32>} : memref<8x32xf32, #tpu.memory_space<vmem>>, vector<8x32xf32>,
    %c0_27 = arith.constant 0 : index
    %c0_28 = arith.constant 0 : index
    %56 = vector.load %arg10[%c0_27, %c0_28] : memref<8x32xf32, #tpu.memory_space<vmem>>, vector<8x32xf32>
    tpu.vector_store %arg10[%c0_27, %c0_28], %54 {strides = array<i32>} : memref<8x32xf32, #tpu.memory_space<vmem>>, vector<8x32xf32>,
    %57 = arith.truncf %54 : vector<8x32xf32> to vector<8x32xbf16>
    %c0_29 = arith.constant 0 : index
    %58 = arith.index_cast %22 : i32 to index
    %c0_30 = arith.constant 0 : index
    %59 = vector.load %arg6[%c0_29, %58, %c0_30] : memref<1x64x32xbf16, #tpu.memory_space<vmem>>, vector<1x8x32xbf16>
    %60 = vector.shape_cast %59 : vector<1x8x32xbf16> to vector<8x32xbf16>
    %61 = vector.shape_cast %57 : vector<8x32xbf16> to vector<1x8x32xbf16>
    tpu.vector_store %arg6[%c0_29, %58, %c0_30], %61 {strides = array<i32>} : memref<1x64x32xbf16, #tpu.memory_space<vmem>>, vector<1x8x32xbf16>,
    %c1_i32 = arith.constant 1 : i32
    %c2_i32_31 = arith.constant 2 : i32
    %62 = arith.muli %c2_i32_31, %c1_i32 : i32
    %c7_i32_32 = arith.constant 7 : i32
    %63 = arith.subi %c7_i32_32, %62 : i32
    %64 = arith.muli %arg0, %63 : i32
    %65 = arith.addi %c1_i32, %64 : i32
    %c8_i32_33 = arith.constant 8 : i32
    %66 = arith.muli %65, %c8_i32_33 : i32
    %67 = tpu.assume_multiple %66, 8 : i32
    %68 = arith.index_cast %67 : i32 to index
    %c0_34 = arith.constant 0 : index
    %69 = vector.load %arg9[%68, %c0_34] : memref<64x128xf32, #tpu.memory_space<vmem>>, vector<8x128xf32>
    %c0_35 = arith.constant 0 : index
    %c0_36 = arith.constant 0 : index
    %70 = vector.load %arg10[%c0_35, %c0_36] : memref<8x32xf32, #tpu.memory_space<vmem>>, vector<8x32xf32>
    %71 = arith.truncf %70 : vector<8x32xf32> to vector<8x32xbf16>
    %cst_37 = arith.constant dense<0.000000e+00> : vector<8x128xf32>
    %72 = tpu.matmul %71, %16, %cst_37 {dimension_numbers = #tpu.dot_dimension_numbers<[1], [0], [0], [1], [0, 0, 1, 1], [], []>} : vector<8x32xbf16>, vector<32x128xbf16>, vector<8x128xf32> -> vector<8x128xf32>
    %73 = arith.addf %69, %72 : vector<8x128xf32>
    %74 = vector.extract_strided_slice %73 {offsets = [0, 0], sizes = [8, 32], strides = [1, 1]} : vector<8x128xf32> to vector<8x32xf32>
    %75 = arith.negf %74 : vector<8x32xf32>
    %76 = math.exp %75 : vector<8x32xf32>
    %cst_38 = arith.constant 1.000000e+00 : f32
    %77 = vector.broadcast %cst_38 : f32 to vector<8x32xf32>
    %78 = arith.addf %77, %76 : vector<8x32xf32>
    %79 = arith.divf %77, %78 : vector<8x32xf32>
    %80 = vector.extract_strided_slice %73 {offsets = [0, 32], sizes = [8, 32], strides = [1, 1]} : vector<8x128xf32> to vector<8x32xf32>
    %81 = arith.negf %80 : vector<8x32xf32>
    %82 = math.exp %81 : vector<8x32xf32>
    %cst_39 = arith.constant 1.000000e+00 : f32
    %83 = vector.broadcast %cst_39 : f32 to vector<8x32xf32>
    %84 = arith.addf %83, %82 : vector<8x32xf32>
    %85 = arith.divf %83, %84 : vector<8x32xf32>
    %86 = vector.extract_strided_slice %73 {offsets = [0, 64], sizes = [8, 32], strides = [1, 1]} : vector<8x128xf32> to vector<8x32xf32>
    %87 = math.tanh %86 : vector<8x32xf32>
    %88 = vector.extract_strided_slice %73 {offsets = [0, 96], sizes = [8, 32], strides = [1, 1]} : vector<8x128xf32> to vector<8x32xf32>
    %89 = arith.negf %88 : vector<8x32xf32>
    %90 = math.exp %89 : vector<8x32xf32>
    %cst_40 = arith.constant 1.000000e+00 : f32
    %91 = vector.broadcast %cst_40 : f32 to vector<8x32xf32>
    %92 = arith.addf %91, %90 : vector<8x32xf32>
    %93 = arith.divf %91, %92 : vector<8x32xf32>
    %c0_41 = arith.constant 0 : index
    %c0_42 = arith.constant 0 : index
    %94 = vector.load %arg11[%c0_41, %c0_42] : memref<8x32xf32, #tpu.memory_space<vmem>>, vector<8x32xf32>
    %95 = arith.mulf %85, %94 : vector<8x32xf32>
    %96 = arith.mulf %79, %87 : vector<8x32xf32>
    %97 = arith.addf %95, %96 : vector<8x32xf32>
    %98 = math.tanh %97 : vector<8x32xf32>
    %99 = arith.mulf %93, %98 : vector<8x32xf32>
    %c0_43 = arith.constant 0 : index
    %c0_44 = arith.constant 0 : index
    %100 = vector.load %arg11[%c0_43, %c0_44] : memref<8x32xf32, #tpu.memory_space<vmem>>, vector<8x32xf32>
    tpu.vector_store %arg11[%c0_43, %c0_44], %97 {strides = array<i32>} : memref<8x32xf32, #tpu.memory_space<vmem>>, vector<8x32xf32>,
    %c0_45 = arith.constant 0 : index
    %c0_46 = arith.constant 0 : index
    %101 = vector.load %arg10[%c0_45, %c0_46] : memref<8x32xf32, #tpu.memory_space<vmem>>, vector<8x32xf32>
    tpu.vector_store %arg10[%c0_45, %c0_46], %99 {strides = array<i32>} : memref<8x32xf32, #tpu.memory_space<vmem>>, vector<8x32xf32>,
    %102 = arith.truncf %99 : vector<8x32xf32> to vector<8x32xbf16>
    %c0_47 = arith.constant 0 : index
    %103 = arith.index_cast %67 : i32 to index
    %c0_48 = arith.constant 0 : index
    %104 = vector.load %arg6[%c0_47, %103, %c0_48] : memref<1x64x32xbf16, #tpu.memory_space<vmem>>, vector<1x8x32xbf16>
    %105 = vector.shape_cast %104 : vector<1x8x32xbf16> to vector<8x32xbf16>
    %106 = vector.shape_cast %102 : vector<8x32xbf16> to vector<1x8x32xbf16>
    tpu.vector_store %arg6[%c0_47, %103, %c0_48], %106 {strides = array<i32>} : memref<1x64x32xbf16, #tpu.memory_space<vmem>>, vector<1x8x32xbf16>,
    %c2_i32_49 = arith.constant 2 : i32
    %c2_i32_50 = arith.constant 2 : i32
    %107 = arith.muli %c2_i32_50, %c2_i32_49 : i32
    %c7_i32_51 = arith.constant 7 : i32
    %108 = arith.subi %c7_i32_51, %107 : i32
    %109 = arith.muli %arg0, %108 : i32
    %110 = arith.addi %c2_i32_49, %109 : i32
    %c8_i32_52 = arith.constant 8 : i32
    %111 = arith.muli %110, %c8_i32_52 : i32
    %112 = tpu.assume_multiple %111, 8 : i32
    %113 = arith.index_cast %112 : i32 to index
    %c0_53 = arith.constant 0 : index
    %114 = vector.load %arg9[%113, %c0_53] : memref<64x128xf32, #tpu.memory_space<vmem>>, vector<8x128xf32>
    %c0_54 = arith.constant 0 : index
    %c0_55 = arith.constant 0 : index
    %115 = vector.load %arg10[%c0_54, %c0_55] : memref<8x32xf32, #tpu.memory_space<vmem>>, vector<8x32xf32>
    %116 = arith.truncf %115 : vector<8x32xf32> to vector<8x32xbf16>
    %cst_56 = arith.constant dense<0.000000e+00> : vector<8x128xf32>
    %117 = tpu.matmul %116, %16, %cst_56 {dimension_numbers = #tpu.dot_dimension_numbers<[1], [0], [0], [1], [0, 0, 1, 1], [], []>} : vector<8x32xbf16>, vector<32x128xbf16>, vector<8x128xf32> -> vector<8x128xf32>
    %118 = arith.addf %114, %117 : vector<8x128xf32>
    %119 = vector.extract_strided_slice %118 {offsets = [0, 0], sizes = [8, 32], strides = [1, 1]} : vector<8x128xf32> to vector<8x32xf32>
    %120 = arith.negf %119 : vector<8x32xf32>
    %121 = math.exp %120 : vector<8x32xf32>
    %cst_57 = arith.constant 1.000000e+00 : f32
    %122 = vector.broadcast %cst_57 : f32 to vector<8x32xf32>
    %123 = arith.addf %122, %121 : vector<8x32xf32>
    %124 = arith.divf %122, %123 : vector<8x32xf32>
    %125 = vector.extract_strided_slice %118 {offsets = [0, 32], sizes = [8, 32], strides = [1, 1]} : vector<8x128xf32> to vector<8x32xf32>
    %126 = arith.negf %125 : vector<8x32xf32>
    %127 = math.exp %126 : vector<8x32xf32>
    %cst_58 = arith.constant 1.000000e+00 : f32
    %128 = vector.broadcast %cst_58 : f32 to vector<8x32xf32>
    %129 = arith.addf %128, %127 : vector<8x32xf32>
    %130 = arith.divf %128, %129 : vector<8x32xf32>
    %131 = vector.extract_strided_slice %118 {offsets = [0, 64], sizes = [8, 32], strides = [1, 1]} : vector<8x128xf32> to vector<8x32xf32>
    %132 = math.tanh %131 : vector<8x32xf32>
    %133 = vector.extract_strided_slice %118 {offsets = [0, 96], sizes = [8, 32], strides = [1, 1]} : vector<8x128xf32> to vector<8x32xf32>
    %134 = arith.negf %133 : vector<8x32xf32>
    %135 = math.exp %134 : vector<8x32xf32>
    %cst_59 = arith.constant 1.000000e+00 : f32
    %136 = vector.broadcast %cst_59 : f32 to vector<8x32xf32>
    %137 = arith.addf %136, %135 : vector<8x32xf32>
    %138 = arith.divf %136, %137 : vector<8x32xf32>
    %c0_60 = arith.constant 0 : index
    %c0_61 = arith.constant 0 : index
    %139 = vector.load %arg11[%c0_60, %c0_61] : memref<8x32xf32, #tpu.memory_space<vmem>>, vector<8x32xf32>
    %140 = arith.mulf %130, %139 : vector<8x32xf32>
    %141 = arith.mulf %124, %132 : vector<8x32xf32>
    %142 = arith.addf %140, %141 : vector<8x32xf32>
    %143 = math.tanh %142 : vector<8x32xf32>
    %144 = arith.mulf %138, %143 : vector<8x32xf32>
    %c0_62 = arith.constant 0 : index
    %c0_63 = arith.constant 0 : index
    %145 = vector.load %arg11[%c0_62, %c0_63] : memref<8x32xf32, #tpu.memory_space<vmem>>, vector<8x32xf32>
    tpu.vector_store %arg11[%c0_62, %c0_63], %142 {strides = array<i32>} : memref<8x32xf32, #tpu.memory_space<vmem>>, vector<8x32xf32>,
    %c0_64 = arith.constant 0 : index
    %c0_65 = arith.constant 0 : index
    %146 = vector.load %arg10[%c0_64, %c0_65] : memref<8x32xf32, #tpu.memory_space<vmem>>, vector<8x32xf32>
    tpu.vector_store %arg10[%c0_64, %c0_65], %144 {strides = array<i32>} : memref<8x32xf32, #tpu.memory_space<vmem>>, vector<8x32xf32>,
    %147 = arith.truncf %144 : vector<8x32xf32> to vector<8x32xbf16>
    %c0_66 = arith.constant 0 : index
    %148 = arith.index_cast %112 : i32 to index
    %c0_67 = arith.constant 0 : index
    %149 = vector.load %arg6[%c0_66, %148, %c0_67] : memref<1x64x32xbf16, #tpu.memory_space<vmem>>, vector<1x8x32xbf16>
    %150 = vector.shape_cast %149 : vector<1x8x32xbf16> to vector<8x32xbf16>
    %151 = vector.shape_cast %147 : vector<8x32xbf16> to vector<1x8x32xbf16>
    tpu.vector_store %arg6[%c0_66, %148, %c0_67], %151 {strides = array<i32>} : memref<1x64x32xbf16, #tpu.memory_space<vmem>>, vector<1x8x32xbf16>,
    %c3_i32 = arith.constant 3 : i32
    %c2_i32_68 = arith.constant 2 : i32
    %152 = arith.muli %c2_i32_68, %c3_i32 : i32
    %c7_i32_69 = arith.constant 7 : i32
    %153 = arith.subi %c7_i32_69, %152 : i32
    %154 = arith.muli %arg0, %153 : i32
    %155 = arith.addi %c3_i32, %154 : i32
    %c8_i32_70 = arith.constant 8 : i32
    %156 = arith.muli %155, %c8_i32_70 : i32
    %157 = tpu.assume_multiple %156, 8 : i32
    %158 = arith.index_cast %157 : i32 to index
    %c0_71 = arith.constant 0 : index
    %159 = vector.load %arg9[%158, %c0_71] : memref<64x128xf32, #tpu.memory_space<vmem>>, vector<8x128xf32>
    %c0_72 = arith.constant 0 : index
    %c0_73 = arith.constant 0 : index
    %160 = vector.load %arg10[%c0_72, %c0_73] : memref<8x32xf32, #tpu.memory_space<vmem>>, vector<8x32xf32>
    %161 = arith.truncf %160 : vector<8x32xf32> to vector<8x32xbf16>
    %cst_74 = arith.constant dense<0.000000e+00> : vector<8x128xf32>
    %162 = tpu.matmul %161, %16, %cst_74 {dimension_numbers = #tpu.dot_dimension_numbers<[1], [0], [0], [1], [0, 0, 1, 1], [], []>} : vector<8x32xbf16>, vector<32x128xbf16>, vector<8x128xf32> -> vector<8x128xf32>
    %163 = arith.addf %159, %162 : vector<8x128xf32>
    %164 = vector.extract_strided_slice %163 {offsets = [0, 0], sizes = [8, 32], strides = [1, 1]} : vector<8x128xf32> to vector<8x32xf32>
    %165 = arith.negf %164 : vector<8x32xf32>
    %166 = math.exp %165 : vector<8x32xf32>
    %cst_75 = arith.constant 1.000000e+00 : f32
    %167 = vector.broadcast %cst_75 : f32 to vector<8x32xf32>
    %168 = arith.addf %167, %166 : vector<8x32xf32>
    %169 = arith.divf %167, %168 : vector<8x32xf32>
    %170 = vector.extract_strided_slice %163 {offsets = [0, 32], sizes = [8, 32], strides = [1, 1]} : vector<8x128xf32> to vector<8x32xf32>
    %171 = arith.negf %170 : vector<8x32xf32>
    %172 = math.exp %171 : vector<8x32xf32>
    %cst_76 = arith.constant 1.000000e+00 : f32
    %173 = vector.broadcast %cst_76 : f32 to vector<8x32xf32>
    %174 = arith.addf %173, %172 : vector<8x32xf32>
    %175 = arith.divf %173, %174 : vector<8x32xf32>
    %176 = vector.extract_strided_slice %163 {offsets = [0, 64], sizes = [8, 32], strides = [1, 1]} : vector<8x128xf32> to vector<8x32xf32>
    %177 = math.tanh %176 : vector<8x32xf32>
    %178 = vector.extract_strided_slice %163 {offsets = [0, 96], sizes = [8, 32], strides = [1, 1]} : vector<8x128xf32> to vector<8x32xf32>
    %179 = arith.negf %178 : vector<8x32xf32>
    %180 = math.exp %179 : vector<8x32xf32>
    %cst_77 = arith.constant 1.000000e+00 : f32
    %181 = vector.broadcast %cst_77 : f32 to vector<8x32xf32>
    %182 = arith.addf %181, %180 : vector<8x32xf32>
    %183 = arith.divf %181, %182 : vector<8x32xf32>
    %c0_78 = arith.constant 0 : index
    %c0_79 = arith.constant 0 : index
    %184 = vector.load %arg11[%c0_78, %c0_79] : memref<8x32xf32, #tpu.memory_space<vmem>>, vector<8x32xf32>
    %185 = arith.mulf %175, %184 : vector<8x32xf32>
    %186 = arith.mulf %169, %177 : vector<8x32xf32>
    %187 = arith.addf %185, %186 : vector<8x32xf32>
    %188 = math.tanh %187 : vector<8x32xf32>
    %189 = arith.mulf %183, %188 : vector<8x32xf32>
    %c0_80 = arith.constant 0 : index
    %c0_81 = arith.constant 0 : index
    %190 = vector.load %arg11[%c0_80, %c0_81] : memref<8x32xf32, #tpu.memory_space<vmem>>, vector<8x32xf32>
    tpu.vector_store %arg11[%c0_80, %c0_81], %187 {strides = array<i32>} : memref<8x32xf32, #tpu.memory_space<vmem>>, vector<8x32xf32>,
    %c0_82 = arith.constant 0 : index
    %c0_83 = arith.constant 0 : index
    %191 = vector.load %arg10[%c0_82, %c0_83] : memref<8x32xf32, #tpu.memory_space<vmem>>, vector<8x32xf32>
    tpu.vector_store %arg10[%c0_82, %c0_83], %189 {strides = array<i32>} : memref<8x32xf32, #tpu.memory_space<vmem>>, vector<8x32xf32>,
    %192 = arith.truncf %189 : vector<8x32xf32> to vector<8x32xbf16>
    %c0_84 = arith.constant 0 : index
    %193 = arith.index_cast %157 : i32 to index
    %c0_85 = arith.constant 0 : index
    %194 = vector.load %arg6[%c0_84, %193, %c0_85] : memref<1x64x32xbf16, #tpu.memory_space<vmem>>, vector<1x8x32xbf16>
    %195 = vector.shape_cast %194 : vector<1x8x32xbf16> to vector<8x32xbf16>
    %196 = vector.shape_cast %192 : vector<8x32xbf16> to vector<1x8x32xbf16>
    tpu.vector_store %arg6[%c0_84, %193, %c0_85], %196 {strides = array<i32>} : memref<1x64x32xbf16, #tpu.memory_space<vmem>>, vector<1x8x32xbf16>,
    %c4_i32 = arith.constant 4 : i32
    %c2_i32_86 = arith.constant 2 : i32
    %197 = arith.muli %c2_i32_86, %c4_i32 : i32
    %c7_i32_87 = arith.constant 7 : i32
    %198 = arith.subi %c7_i32_87, %197 : i32
    %199 = arith.muli %arg0, %198 : i32
    %200 = arith.addi %c4_i32, %199 : i32
    %c8_i32_88 = arith.constant 8 : i32
    %201 = arith.muli %200, %c8_i32_88 : i32
    %202 = tpu.assume_multiple %201, 8 : i32
    %203 = arith.index_cast %202 : i32 to index
    %c0_89 = arith.constant 0 : index
    %204 = vector.load %arg9[%203, %c0_89] : memref<64x128xf32, #tpu.memory_space<vmem>>, vector<8x128xf32>
    %c0_90 = arith.constant 0 : index
    %c0_91 = arith.constant 0 : index
    %205 = vector.load %arg10[%c0_90, %c0_91] : memref<8x32xf32, #tpu.memory_space<vmem>>, vector<8x32xf32>
    %206 = arith.truncf %205 : vector<8x32xf32> to vector<8x32xbf16>
    %cst_92 = arith.constant dense<0.000000e+00> : vector<8x128xf32>
    %207 = tpu.matmul %206, %16, %cst_92 {dimension_numbers = #tpu.dot_dimension_numbers<[1], [0], [0], [1], [0, 0, 1, 1], [], []>} : vector<8x32xbf16>, vector<32x128xbf16>, vector<8x128xf32> -> vector<8x128xf32>
    %208 = arith.addf %204, %207 : vector<8x128xf32>
    %209 = vector.extract_strided_slice %208 {offsets = [0, 0], sizes = [8, 32], strides = [1, 1]} : vector<8x128xf32> to vector<8x32xf32>
    %210 = arith.negf %209 : vector<8x32xf32>
    %211 = math.exp %210 : vector<8x32xf32>
    %cst_93 = arith.constant 1.000000e+00 : f32
    %212 = vector.broadcast %cst_93 : f32 to vector<8x32xf32>
    %213 = arith.addf %212, %211 : vector<8x32xf32>
    %214 = arith.divf %212, %213 : vector<8x32xf32>
    %215 = vector.extract_strided_slice %208 {offsets = [0, 32], sizes = [8, 32], strides = [1, 1]} : vector<8x128xf32> to vector<8x32xf32>
    %216 = arith.negf %215 : vector<8x32xf32>
    %217 = math.exp %216 : vector<8x32xf32>
    %cst_94 = arith.constant 1.000000e+00 : f32
    %218 = vector.broadcast %cst_94 : f32 to vector<8x32xf32>
    %219 = arith.addf %218, %217 : vector<8x32xf32>
    %220 = arith.divf %218, %219 : vector<8x32xf32>
    %221 = vector.extract_strided_slice %208 {offsets = [0, 64], sizes = [8, 32], strides = [1, 1]} : vector<8x128xf32> to vector<8x32xf32>
    %222 = math.tanh %221 : vector<8x32xf32>
    %223 = vector.extract_strided_slice %208 {offsets = [0, 96], sizes = [8, 32], strides = [1, 1]} : vector<8x128xf32> to vector<8x32xf32>
    %224 = arith.negf %223 : vector<8x32xf32>
    %225 = math.exp %224 : vector<8x32xf32>
    %cst_95 = arith.constant 1.000000e+00 : f32
    %226 = vector.broadcast %cst_95 : f32 to vector<8x32xf32>
    %227 = arith.addf %226, %225 : vector<8x32xf32>
    %228 = arith.divf %226, %227 : vector<8x32xf32>
    %c0_96 = arith.constant 0 : index
    %c0_97 = arith.constant 0 : index
    %229 = vector.load %arg11[%c0_96, %c0_97] : memref<8x32xf32, #tpu.memory_space<vmem>>, vector<8x32xf32>
    %230 = arith.mulf %220, %229 : vector<8x32xf32>
    %231 = arith.mulf %214, %222 : vector<8x32xf32>
    %232 = arith.addf %230, %231 : vector<8x32xf32>
    %233 = math.tanh %232 : vector<8x32xf32>
    %234 = arith.mulf %228, %233 : vector<8x32xf32>
    %c0_98 = arith.constant 0 : index
    %c0_99 = arith.constant 0 : index
    %235 = vector.load %arg11[%c0_98, %c0_99] : memref<8x32xf32, #tpu.memory_space<vmem>>, vector<8x32xf32>
    tpu.vector_store %arg11[%c0_98, %c0_99], %232 {strides = array<i32>} : memref<8x32xf32, #tpu.memory_space<vmem>>, vector<8x32xf32>,
    %c0_100 = arith.constant 0 : index
    %c0_101 = arith.constant 0 : index
    %236 = vector.load %arg10[%c0_100, %c0_101] : memref<8x32xf32, #tpu.memory_space<vmem>>, vector<8x32xf32>
    tpu.vector_store %arg10[%c0_100, %c0_101], %234 {strides = array<i32>} : memref<8x32xf32, #tpu.memory_space<vmem>>, vector<8x32xf32>,
    %237 = arith.truncf %234 : vector<8x32xf32> to vector<8x32xbf16>
    %c0_102 = arith.constant 0 : index
    %238 = arith.index_cast %202 : i32 to index
    %c0_103 = arith.constant 0 : index
    %239 = vector.load %arg6[%c0_102, %238, %c0_103] : memref<1x64x32xbf16, #tpu.memory_space<vmem>>, vector<1x8x32xbf16>
    %240 = vector.shape_cast %239 : vector<1x8x32xbf16> to vector<8x32xbf16>
    %241 = vector.shape_cast %237 : vector<8x32xbf16> to vector<1x8x32xbf16>
    tpu.vector_store %arg6[%c0_102, %238, %c0_103], %241 {strides = array<i32>} : memref<1x64x32xbf16, #tpu.memory_space<vmem>>, vector<1x8x32xbf16>,
    %c5_i32 = arith.constant 5 : i32
    %c2_i32_104 = arith.constant 2 : i32
    %242 = arith.muli %c2_i32_104, %c5_i32 : i32
    %c7_i32_105 = arith.constant 7 : i32
    %243 = arith.subi %c7_i32_105, %242 : i32
    %244 = arith.muli %arg0, %243 : i32
    %245 = arith.addi %c5_i32, %244 : i32
    %c8_i32_106 = arith.constant 8 : i32
    %246 = arith.muli %245, %c8_i32_106 : i32
    %247 = tpu.assume_multiple %246, 8 : i32
    %248 = arith.index_cast %247 : i32 to index
    %c0_107 = arith.constant 0 : index
    %249 = vector.load %arg9[%248, %c0_107] : memref<64x128xf32, #tpu.memory_space<vmem>>, vector<8x128xf32>
    %c0_108 = arith.constant 0 : index
    %c0_109 = arith.constant 0 : index
    %250 = vector.load %arg10[%c0_108, %c0_109] : memref<8x32xf32, #tpu.memory_space<vmem>>, vector<8x32xf32>
    %251 = arith.truncf %250 : vector<8x32xf32> to vector<8x32xbf16>
    %cst_110 = arith.constant dense<0.000000e+00> : vector<8x128xf32>
    %252 = tpu.matmul %251, %16, %cst_110 {dimension_numbers = #tpu.dot_dimension_numbers<[1], [0], [0], [1], [0, 0, 1, 1], [], []>} : vector<8x32xbf16>, vector<32x128xbf16>, vector<8x128xf32> -> vector<8x128xf32>
    %253 = arith.addf %249, %252 : vector<8x128xf32>
    %254 = vector.extract_strided_slice %253 {offsets = [0, 0], sizes = [8, 32], strides = [1, 1]} : vector<8x128xf32> to vector<8x32xf32>
    %255 = arith.negf %254 : vector<8x32xf32>
    %256 = math.exp %255 : vector<8x32xf32>
    %cst_111 = arith.constant 1.000000e+00 : f32
    %257 = vector.broadcast %cst_111 : f32 to vector<8x32xf32>
    %258 = arith.addf %257, %256 : vector<8x32xf32>
    %259 = arith.divf %257, %258 : vector<8x32xf32>
    %260 = vector.extract_strided_slice %253 {offsets = [0, 32], sizes = [8, 32], strides = [1, 1]} : vector<8x128xf32> to vector<8x32xf32>
    %261 = arith.negf %260 : vector<8x32xf32>
    %262 = math.exp %261 : vector<8x32xf32>
    %cst_112 = arith.constant 1.000000e+00 : f32
    %263 = vector.broadcast %cst_112 : f32 to vector<8x32xf32>
    %264 = arith.addf %263, %262 : vector<8x32xf32>
    %265 = arith.divf %263, %264 : vector<8x32xf32>
    %266 = vector.extract_strided_slice %253 {offsets = [0, 64], sizes = [8, 32], strides = [1, 1]} : vector<8x128xf32> to vector<8x32xf32>
    %267 = math.tanh %266 : vector<8x32xf32>
    %268 = vector.extract_strided_slice %253 {offsets = [0, 96], sizes = [8, 32], strides = [1, 1]} : vector<8x128xf32> to vector<8x32xf32>
    %269 = arith.negf %268 : vector<8x32xf32>
    %270 = math.exp %269 : vector<8x32xf32>
    %cst_113 = arith.constant 1.000000e+00 : f32
    %271 = vector.broadcast %cst_113 : f32 to vector<8x32xf32>
    %272 = arith.addf %271, %270 : vector<8x32xf32>
    %273 = arith.divf %271, %272 : vector<8x32xf32>
    %c0_114 = arith.constant 0 : index
    %c0_115 = arith.constant 0 : index
    %274 = vector.load %arg11[%c0_114, %c0_115] : memref<8x32xf32, #tpu.memory_space<vmem>>, vector<8x32xf32>
    %275 = arith.mulf %265, %274 : vector<8x32xf32>
    %276 = arith.mulf %259, %267 : vector<8x32xf32>
    %277 = arith.addf %275, %276 : vector<8x32xf32>
    %278 = math.tanh %277 : vector<8x32xf32>
    %279 = arith.mulf %273, %278 : vector<8x32xf32>
    %c0_116 = arith.constant 0 : index
    %c0_117 = arith.constant 0 : index
    %280 = vector.load %arg11[%c0_116, %c0_117] : memref<8x32xf32, #tpu.memory_space<vmem>>, vector<8x32xf32>
    tpu.vector_store %arg11[%c0_116, %c0_117], %277 {strides = array<i32>} : memref<8x32xf32, #tpu.memory_space<vmem>>, vector<8x32xf32>,
    %c0_118 = arith.constant 0 : index
    %c0_119 = arith.constant 0 : index
    %281 = vector.load %arg10[%c0_118, %c0_119] : memref<8x32xf32, #tpu.memory_space<vmem>>, vector<8x32xf32>
    tpu.vector_store %arg10[%c0_118, %c0_119], %279 {strides = array<i32>} : memref<8x32xf32, #tpu.memory_space<vmem>>, vector<8x32xf32>,
    %282 = arith.truncf %279 : vector<8x32xf32> to vector<8x32xbf16>
    %c0_120 = arith.constant 0 : index
    %283 = arith.index_cast %247 : i32 to index
    %c0_121 = arith.constant 0 : index
    %284 = vector.load %arg6[%c0_120, %283, %c0_121] : memref<1x64x32xbf16, #tpu.memory_space<vmem>>, vector<1x8x32xbf16>
    %285 = vector.shape_cast %284 : vector<1x8x32xbf16> to vector<8x32xbf16>
    %286 = vector.shape_cast %282 : vector<8x32xbf16> to vector<1x8x32xbf16>
    tpu.vector_store %arg6[%c0_120, %283, %c0_121], %286 {strides = array<i32>} : memref<1x64x32xbf16, #tpu.memory_space<vmem>>, vector<1x8x32xbf16>,
    %c6_i32 = arith.constant 6 : i32
    %c2_i32_122 = arith.constant 2 : i32
    %287 = arith.muli %c2_i32_122, %c6_i32 : i32
    %c7_i32_123 = arith.constant 7 : i32
    %288 = arith.subi %c7_i32_123, %287 : i32
    %289 = arith.muli %arg0, %288 : i32
    %290 = arith.addi %c6_i32, %289 : i32
    %c8_i32_124 = arith.constant 8 : i32
    %291 = arith.muli %290, %c8_i32_124 : i32
    %292 = tpu.assume_multiple %291, 8 : i32
    %293 = arith.index_cast %292 : i32 to index
    %c0_125 = arith.constant 0 : index
    %294 = vector.load %arg9[%293, %c0_125] : memref<64x128xf32, #tpu.memory_space<vmem>>, vector<8x128xf32>
    %c0_126 = arith.constant 0 : index
    %c0_127 = arith.constant 0 : index
    %295 = vector.load %arg10[%c0_126, %c0_127] : memref<8x32xf32, #tpu.memory_space<vmem>>, vector<8x32xf32>
    %296 = arith.truncf %295 : vector<8x32xf32> to vector<8x32xbf16>
    %cst_128 = arith.constant dense<0.000000e+00> : vector<8x128xf32>
    %297 = tpu.matmul %296, %16, %cst_128 {dimension_numbers = #tpu.dot_dimension_numbers<[1], [0], [0], [1], [0, 0, 1, 1], [], []>} : vector<8x32xbf16>, vector<32x128xbf16>, vector<8x128xf32> -> vector<8x128xf32>
    %298 = arith.addf %294, %297 : vector<8x128xf32>
    %299 = vector.extract_strided_slice %298 {offsets = [0, 0], sizes = [8, 32], strides = [1, 1]} : vector<8x128xf32> to vector<8x32xf32>
    %300 = arith.negf %299 : vector<8x32xf32>
    %301 = math.exp %300 : vector<8x32xf32>
    %cst_129 = arith.constant 1.000000e+00 : f32
    %302 = vector.broadcast %cst_129 : f32 to vector<8x32xf32>
    %303 = arith.addf %302, %301 : vector<8x32xf32>
    %304 = arith.divf %302, %303 : vector<8x32xf32>
    %305 = vector.extract_strided_slice %298 {offsets = [0, 32], sizes = [8, 32], strides = [1, 1]} : vector<8x128xf32> to vector<8x32xf32>
    %306 = arith.negf %305 : vector<8x32xf32>
    %307 = math.exp %306 : vector<8x32xf32>
    %cst_130 = arith.constant 1.000000e+00 : f32
    %308 = vector.broadcast %cst_130 : f32 to vector<8x32xf32>
    %309 = arith.addf %308, %307 : vector<8x32xf32>
    %310 = arith.divf %308, %309 : vector<8x32xf32>
    %311 = vector.extract_strided_slice %298 {offsets = [0, 64], sizes = [8, 32], strides = [1, 1]} : vector<8x128xf32> to vector<8x32xf32>
    %312 = math.tanh %311 : vector<8x32xf32>
    %313 = vector.extract_strided_slice %298 {offsets = [0, 96], sizes = [8, 32], strides = [1, 1]} : vector<8x128xf32> to vector<8x32xf32>
    %314 = arith.negf %313 : vector<8x32xf32>
    %315 = math.exp %314 : vector<8x32xf32>
    %cst_131 = arith.constant 1.000000e+00 : f32
    %316 = vector.broadcast %cst_131 : f32 to vector<8x32xf32>
    %317 = arith.addf %316, %315 : vector<8x32xf32>
    %318 = arith.divf %316, %317 : vector<8x32xf32>
    %c0_132 = arith.constant 0 : index
    %c0_133 = arith.constant 0 : index
    %319 = vector.load %arg11[%c0_132, %c0_133] : memref<8x32xf32, #tpu.memory_space<vmem>>, vector<8x32xf32>
    %320 = arith.mulf %310, %319 : vector<8x32xf32>
    %321 = arith.mulf %304, %312 : vector<8x32xf32>
    %322 = arith.addf %320, %321 : vector<8x32xf32>
    %323 = math.tanh %322 : vector<8x32xf32>
    %324 = arith.mulf %318, %323 : vector<8x32xf32>
    %c0_134 = arith.constant 0 : index
    %c0_135 = arith.constant 0 : index
    %325 = vector.load %arg11[%c0_134, %c0_135] : memref<8x32xf32, #tpu.memory_space<vmem>>, vector<8x32xf32>
    tpu.vector_store %arg11[%c0_134, %c0_135], %322 {strides = array<i32>} : memref<8x32xf32, #tpu.memory_space<vmem>>, vector<8x32xf32>,
    %c0_136 = arith.constant 0 : index
    %c0_137 = arith.constant 0 : index
    %326 = vector.load %arg10[%c0_136, %c0_137] : memref<8x32xf32, #tpu.memory_space<vmem>>, vector<8x32xf32>
    tpu.vector_store %arg10[%c0_136, %c0_137], %324 {strides = array<i32>} : memref<8x32xf32, #tpu.memory_space<vmem>>, vector<8x32xf32>,
    %327 = arith.truncf %324 : vector<8x32xf32> to vector<8x32xbf16>
    %c0_138 = arith.constant 0 : index
    %328 = arith.index_cast %292 : i32 to index
    %c0_139 = arith.constant 0 : index
    %329 = vector.load %arg6[%c0_138, %328, %c0_139] : memref<1x64x32xbf16, #tpu.memory_space<vmem>>, vector<1x8x32xbf16>
    %330 = vector.shape_cast %329 : vector<1x8x32xbf16> to vector<8x32xbf16>
    %331 = vector.shape_cast %327 : vector<8x32xbf16> to vector<1x8x32xbf16>
    tpu.vector_store %arg6[%c0_138, %328, %c0_139], %331 {strides = array<i32>} : memref<1x64x32xbf16, #tpu.memory_space<vmem>>, vector<1x8x32xbf16>,
    %c7_i32_140 = arith.constant 7 : i32
    %c2_i32_141 = arith.constant 2 : i32
    %332 = arith.muli %c2_i32_141, %c7_i32_140 : i32
    %c7_i32_142 = arith.constant 7 : i32
    %333 = arith.subi %c7_i32_142, %332 : i32
    %334 = arith.muli %arg0, %333 : i32
    %335 = arith.addi %c7_i32_140, %334 : i32
    %c8_i32_143 = arith.constant 8 : i32
    %336 = arith.muli %335, %c8_i32_143 : i32
    %337 = tpu.assume_multiple %336, 8 : i32
    %338 = arith.index_cast %337 : i32 to index
    %c0_144 = arith.constant 0 : index
    %339 = vector.load %arg9[%338, %c0_144] : memref<64x128xf32, #tpu.memory_space<vmem>>, vector<8x128xf32>
    %c0_145 = arith.constant 0 : index
    %c0_146 = arith.constant 0 : index
    %340 = vector.load %arg10[%c0_145, %c0_146] : memref<8x32xf32, #tpu.memory_space<vmem>>, vector<8x32xf32>
    %341 = arith.truncf %340 : vector<8x32xf32> to vector<8x32xbf16>
    %cst_147 = arith.constant dense<0.000000e+00> : vector<8x128xf32>
    %342 = tpu.matmul %341, %16, %cst_147 {dimension_numbers = #tpu.dot_dimension_numbers<[1], [0], [0], [1], [0, 0, 1, 1], [], []>} : vector<8x32xbf16>, vector<32x128xbf16>, vector<8x128xf32> -> vector<8x128xf32>
    %343 = arith.addf %339, %342 : vector<8x128xf32>
    %344 = vector.extract_strided_slice %343 {offsets = [0, 0], sizes = [8, 32], strides = [1, 1]} : vector<8x128xf32> to vector<8x32xf32>
    %345 = arith.negf %344 : vector<8x32xf32>
    %346 = math.exp %345 : vector<8x32xf32>
    %cst_148 = arith.constant 1.000000e+00 : f32
    %347 = vector.broadcast %cst_148 : f32 to vector<8x32xf32>
    %348 = arith.addf %347, %346 : vector<8x32xf32>
    %349 = arith.divf %347, %348 : vector<8x32xf32>
    %350 = vector.extract_strided_slice %343 {offsets = [0, 32], sizes = [8, 32], strides = [1, 1]} : vector<8x128xf32> to vector<8x32xf32>
    %351 = arith.negf %350 : vector<8x32xf32>
    %352 = math.exp %351 : vector<8x32xf32>
    %cst_149 = arith.constant 1.000000e+00 : f32
    %353 = vector.broadcast %cst_149 : f32 to vector<8x32xf32>
    %354 = arith.addf %353, %352 : vector<8x32xf32>
    %355 = arith.divf %353, %354 : vector<8x32xf32>
    %356 = vector.extract_strided_slice %343 {offsets = [0, 64], sizes = [8, 32], strides = [1, 1]} : vector<8x128xf32> to vector<8x32xf32>
    %357 = math.tanh %356 : vector<8x32xf32>
    %358 = vector.extract_strided_slice %343 {offsets = [0, 96], sizes = [8, 32], strides = [1, 1]} : vector<8x128xf32> to vector<8x32xf32>
    %359 = arith.negf %358 : vector<8x32xf32>
    %360 = math.exp %359 : vector<8x32xf32>
    %cst_150 = arith.constant 1.000000e+00 : f32
    %361 = vector.broadcast %cst_150 : f32 to vector<8x32xf32>
    %362 = arith.addf %361, %360 : vector<8x32xf32>
    %363 = arith.divf %361, %362 : vector<8x32xf32>
    %c0_151 = arith.constant 0 : index
    %c0_152 = arith.constant 0 : index
    %364 = vector.load %arg11[%c0_151, %c0_152] : memref<8x32xf32, #tpu.memory_space<vmem>>, vector<8x32xf32>
    %365 = arith.mulf %355, %364 : vector<8x32xf32>
    %366 = arith.mulf %349, %357 : vector<8x32xf32>
    %367 = arith.addf %365, %366 : vector<8x32xf32>
    %368 = math.tanh %367 : vector<8x32xf32>
    %369 = arith.mulf %363, %368 : vector<8x32xf32>
    %c0_153 = arith.constant 0 : index
    %c0_154 = arith.constant 0 : index
    %370 = vector.load %arg11[%c0_153, %c0_154] : memref<8x32xf32, #tpu.memory_space<vmem>>, vector<8x32xf32>
    tpu.vector_store %arg11[%c0_153, %c0_154], %367 {strides = array<i32>} : memref<8x32xf32, #tpu.memory_space<vmem>>, vector<8x32xf32>,
    %c0_155 = arith.constant 0 : index
    %c0_156 = arith.constant 0 : index
    %371 = vector.load %arg10[%c0_155, %c0_156] : memref<8x32xf32, #tpu.memory_space<vmem>>, vector<8x32xf32>
    tpu.vector_store %arg10[%c0_155, %c0_156], %369 {strides = array<i32>} : memref<8x32xf32, #tpu.memory_space<vmem>>, vector<8x32xf32>,
    %372 = arith.truncf %369 : vector<8x32xf32> to vector<8x32xbf16>
    %c0_157 = arith.constant 0 : index
    %373 = arith.index_cast %337 : i32 to index
    %c0_158 = arith.constant 0 : index
    %374 = vector.load %arg6[%c0_157, %373, %c0_158] : memref<1x64x32xbf16, #tpu.memory_space<vmem>>, vector<1x8x32xbf16>
    %375 = vector.shape_cast %374 : vector<1x8x32xbf16> to vector<8x32xbf16>
    %376 = vector.shape_cast %372 : vector<8x32xbf16> to vector<1x8x32xbf16>
    tpu.vector_store %arg6[%c0_157, %373, %c0_158], %376 {strides = array<i32>} : memref<1x64x32xbf16, #tpu.memory_space<vmem>>, vector<1x8x32xbf16>,
    %c8_i32_159 = arith.constant 8 : i32
    %c0_i32_160 = arith.constant 0 : i32
    %377 = arith.cmpi eq, %arg1, %c0_i32_160 : i32
    %378 = arith.extui %377 : i1 to i32
    %c0_i32_161 = arith.constant 0 : i32
    %379 = arith.cmpi ne, %378, %c0_i32_161 : i32
    scf.if %379 {
      %c0_162 = arith.constant 0 : index
      %c0_163 = arith.constant 0 : index
      %380 = vector.load %arg10[%c0_162, %c0_163] : memref<8x32xf32, #tpu.memory_space<vmem>>, vector<8x32xf32>
      %c0_164 = arith.constant 0 : index
      %c0_165 = arith.constant 0 : index
      %c0_166 = arith.constant 0 : index
      %381 = vector.load %arg7[%c0_164, %c0_165, %c0_166] : memref<1x8x32xf32, #tpu.memory_space<vmem>>, vector<1x8x32xf32>
      %382 = vector.shape_cast %381 : vector<1x8x32xf32> to vector<8x32xf32>
      %383 = vector.shape_cast %380 : vector<8x32xf32> to vector<1x8x32xf32>
      tpu.vector_store %arg7[%c0_164, %c0_165, %c0_166], %383 {strides = array<i32>} : memref<1x8x32xf32, #tpu.memory_space<vmem>>, vector<1x8x32xf32>,
      %c0_167 = arith.constant 0 : index
      %c0_168 = arith.constant 0 : index
      %384 = vector.load %arg11[%c0_167, %c0_168] : memref<8x32xf32, #tpu.memory_space<vmem>>, vector<8x32xf32>
      %c0_169 = arith.constant 0 : index
      %c0_170 = arith.constant 0 : index
      %c0_171 = arith.constant 0 : index
      %385 = vector.load %arg8[%c0_169, %c0_170, %c0_171] : memref<1x8x32xf32, #tpu.memory_space<vmem>>, vector<1x8x32xf32>
      %386 = vector.shape_cast %385 : vector<1x8x32xf32> to vector<8x32xf32>
      %387 = vector.shape_cast %384 : vector<8x32xf32> to vector<1x8x32xf32>
      tpu.vector_store %arg8[%c0_169, %c0_170, %c0_171], %387 {strides = array<i32>} : memref<1x8x32xf32, #tpu.memory_space<vmem>>, vector<1x8x32xf32>,
    } else {
    }
    return
  }
  func.func @transform_0(%arg0: i32, %arg1: i32) -> (i32, i32, i32) {
    %c2_i32 = arith.constant 2 : i32
    %0 = arith.muli %c2_i32, %arg1 : i32
    %c0_i32 = arith.constant 0 : i32
    %1 = arith.subi %c0_i32, %0 : i32
    %2 = arith.muli %arg0, %1 : i32
    %3 = arith.addi %arg1, %2 : i32
    %c0_i32_0 = arith.constant 0 : i32
    %c0_i32_1 = arith.constant 0 : i32
    %c0_i32_2 = arith.constant 0 : i32
    return %c0_i32_0, %3, %c0_i32_1 : i32, i32, i32
  }
  func.func @transform_1(%arg0: i32, %arg1: i32) -> (i32, i32, i32) {
    %c0_i32 = arith.constant 0 : i32
    %c0_i32_0 = arith.constant 0 : i32
    %c0_i32_1 = arith.constant 0 : i32
    return %arg0, %c0_i32, %c0_i32_0 : i32, i32, i32
  }
  func.func @transform_2(%arg0: i32, %arg1: i32) -> (i32, i32, i32) {
    %c0_i32 = arith.constant 0 : i32
    %c0_i32_0 = arith.constant 0 : i32
    %c0_i32_1 = arith.constant 0 : i32
    return %arg0, %c0_i32, %c0_i32_0 : i32, i32, i32
  }
  func.func @transform_3(%arg0: i32, %arg1: i32) -> (i32, i32, i32) {
    %c0_i32 = arith.constant 0 : i32
    %c0_i32_0 = arith.constant 0 : i32
    %c0_i32_1 = arith.constant 0 : i32
    return %arg0, %c0_i32, %c0_i32_0 : i32, i32, i32
  }
  func.func @transform_4(%arg0: i32, %arg1: i32) -> (i32, i32, i32) {
    %c2_i32 = arith.constant 2 : i32
    %0 = arith.muli %c2_i32, %arg1 : i32
    %c0_i32 = arith.constant 0 : i32
    %1 = arith.subi %c0_i32, %0 : i32
    %2 = arith.muli %arg0, %1 : i32
    %3 = arith.addi %arg1, %2 : i32
    %c0_i32_0 = arith.constant 0 : i32
    %c0_i32_1 = arith.constant 0 : i32
    return %arg0, %3, %c0_i32_0 : i32, i32, i32
  }
  func.func @transform_5(%arg0: i32, %arg1: i32) -> (i32, i32, i32) {
    %c0_i32 = arith.constant 0 : i32
    %c0_i32_0 = arith.constant 0 : i32
    %c0_i32_1 = arith.constant 0 : i32
    return %arg0, %c0_i32, %c0_i32_0 : i32, i32, i32
  }
  func.func @transform_6(%arg0: i32, %arg1: i32) -> (i32, i32, i32) {
    %c0_i32 = arith.constant 0 : i32
    %c0_i32_0 = arith.constant 0 : i32
    %c0_i32_1 = arith.constant 0 : i32
    return %arg0, %c0_i32, %c0_i32_0 : i32, i32, i32
  }
}

</mosaic_0001>

<bundles_post_ra>
// kernel: tpu_custom_call.1
= control target key start
LH: loop header
LB: loop body
LE: loop exit
PB: predicated region body
PF: predicated region fallthrough
CT: control target
= control target key end

     0   :  { %s2701_s0 = inlined_call_operand.vmem [shape: bf16[1,64,16], index: 0, kind: input, shape index: {}]   ;;  %s2702_s1 = inlined_call_operand.hbm [shape: bf16[2,16,128], index: 1, kind: input, shape index: {}]   ;;  %s2703_s2 = inlined_call_operand.vmem [shape: bf16[2,32,128], index: 2, kind: input, shape index: {}]   ;;  %s2704_s3 = inlined_call_operand.vmem [shape: f32[2,1,128], index: 3, kind: input, shape index: {}]   ;;  %s2705_s4 = inlined_call_operand.vmem [shape: bf16[2,64,32], index: 4, kind: output, shape index: {0}]   ;;  %s2706_s5 = inlined_call_operand.hbm [shape: f32[2,8,32], index: 5, kind: output, shape index: {1}]   ;;  %s2707_s6 = inlined_call_operand.hbm [shape: f32[2,8,32], index: 6, kind: output, shape index: {2}]  }
   0x1   :  { %2717 = sst [smem:[#allocation14_spill]] %s2701_s0 }
   0x2   :  { %2718 = sst [smem:[#allocation15_spill]] %s2702_s1 }
   0x3   :  { %2719 = sst [smem:[#allocation16_spill]] %s2703_s2 }
   0x4   :  { %2720 = sst [smem:[#allocation17_spill]] %s2704_s3 }
   0x5   :  { %2721 = sst [smem:[#allocation18_spill]] %s2705_s4 }
   0x6   :  { %12 = vsyncpa [#allocation6], 0 }
   0x7   :  { %14 = vsyncpa [#allocation6 + $0x1], 0 }
   0x8   :  { %15 = vsyncpa [#allocation7], 0 }
   0x9   :  { %17 = vsyncpa [#allocation7 + $0x1], 0 }
   0xa   :  { %18 = vsyncpa [#allocation10], 0 }
   0xb   :  { %20 = vsyncpa [#allocation10 + $0x1], 0  ;;  %s2226_s21 = smov 0   ;;  %s2228_s22 = smov 0  }
   0xc   :  { %s2230_s23 = smov 0   ;;  %s2232_s24 = smov 0  }
   0xd   :  { %s2234_s25 = smov 0   ;;  %s2236_s26 = smov 0  }
   0xe LB: > { %s1674_s27 = sadd.s32 4294967295, %s2179_s26   ;;  %s1675_s28 = sadd.s32 4294967294, %s2179_s26   ;;  %s2179_s26 = sphi %s2236_s26, %s26_s26   ;;  %s2175_s25 = sphi %s2234_s25, %s2747_s25   ;;  %s2171_s24 = sphi %s2232_s24, %s2746_s24   ;;  %s2167_s23 = sphi %s2230_s23, %s2745_s23   ;;  %s2163_s22 = sphi %s2228_s22, %s2744_s22   ;;  %s2159_s21 = sphi %s2226_s21, %s2743_s21  }
   0xf   : > { %s38_s29 = sadd.s32 1, %s2175_s25  ;;  %s79_s30 = sadd.s32 1, %s2167_s23 }
  0x10   : > { %p40_p0 = scmp.ge.s32.totalorder %s38_s29, 2  ;;  %p86_p1 = scmp.ne.s32.totalorder %s2167_s23, %s2163_s22 }
  0x11   : > { %p87_p2 = scmp.eq.s32.totalorder %s2179_s26, 0  ;;  %p92_p3 = scmp.ne.s32.totalorder %s2163_s22, %s2159_s21 }
  0x12   : > { %s2749_s29 = smov (%p40_p0, %s38_s29), 0  ;;  %p93_p5 = scmp.eq.s32.totalorder %s1674_s27, 0 }
  0x13   : > { %p2267_p4 = por %p87_p2, %p86_p1  ;;  %s76_s8 = ssub.s32 %s2175_s25, %s2749_s29 }
  0x14   : > { %p204_p6 = scmp.eq.s32.totalorder %s1674_s27, 1  ;;  %p77_p7 = scmp.eq.s32.totalorder %s76_s8, 0 }
  0x15   : > { %p2273_p8 = por %p93_p5, %p92_p3  ;;  %p210_p10 = scmp.eq.s32.totalorder %s1675_s28, 1 }
  0x16   : > { %p2277_p9 = por %p204_p6, %p86_p1  ;;  %p1907_p13 = scmp.lt.s32.totalorder %s2179_s26, 2 }
  0x17   : > { %s2282_s11 = scalar_select %p77_p7, %s2167_s23, %s79_s30  }
  0x18   : > { %s2724_s10 = scalar_select %p2277_p9, 1, 0 }
  0x19   : > { %p2284_p11 = por %p210_p10, %p92_p3  ;;  %s273_s13 = sand.u32 1, %s2167_s23  }
  0x1a   : > { %s1679_s14 = sshll.u32 %s273_s13, 3  ;;  %s1759_s15 = sshll.u32 %s2175_s25, 7 }
  0x1b   : > { %s2725_s12 = scalar_select %p2284_p11, 1, 0 }
  0x1c   : > { %s2726_s1 = sld [smem:[#allocation15_spill]]  ;;  %s277_s19 = scalar_lea.vmem [#allocation5], %s1679_s14 }
  0x1d   : > { %s284_s20 = sshll.u32 %s277_s19, 4  ;;  %p2301_p0 = pnand %p1907_p13, %p2267_p4  ;;  %s2297_s20 = int_to_ptr.vmem [resolvable:$true] %s284_s20 }
  0x1e   : > { %s2306_s28 = scalar_lea.sflag [#allocation6], %s273_s13 }
  0x1f   : > { %p2037_p3 = pneg %p2301_p0 }
  0x22   : > { %s2295_s18 = scalar_lea.hbm %s2726_s1, %s1759_s15  ;;  %s2040_s7 = scalar_lea.hbm %s2726_s1, 256 }
  0x23   : > { %s2035_s30 = scalar_lea.hbm %s2295_s18, 128  ;;  %p2041_p4 = scmp.lt.u32.totalorder %s2295_s18, %s2726_s1 }
  0x24   : > { %p2036_p2 = scmp.ne.s32.totalorder %s2295_s18, %s2035_s30  ;;  %p2042_p7 = scmp.lt.u32.totalorder %s2040_s7, %s2035_s30 }
  0x25   : > { %p2044_p13 = scmp.lt.u32.totalorder %s2035_s30, %s2295_s18 }
  0x26   : > { %p2038_p5 = pnand %p2037_p3, %p2036_p2  ;;  %p2043_p10 = por %p2042_p7, %p2041_p4 }
  0x28   : > { %p2039_p6 = pneg %p2038_p5  ;;  %p2045_p12 = por %p2044_p13, %p2043_p10 }
  0x2a   : > { %p2046_p1 = pnand %p2045_p12, %p2039_p6 }
  0x2c   : > { %2049 = shalt.err (!%p2046_p1)
}
  0x2d   : > { %s2050_s13 = scalar_lea.vmem %s2297_s20, 128  ;;  %s2181_s17 = smov [#allocation5]  }
  0x2e   : > { %p2051_p2 = scmp.ne.s32.totalorder %s2297_s20, %s2050_s13  ;;  %s2055_s19 = sshll.u32 %s2181_s17, 4  ;;  %s2056_s19 = int_to_ptr.vmem [resolvable:$false] %s2055_s19 }
  0x2f   : > { %s2057_s8 = scalar_lea.vmem %s2056_s19, 256  ;;  %p2058_p9 = scmp.lt.s32.totalorder %s2297_s20, %s2056_s19 }
  0x30   : > { %p2053_p5 = pnand %p2051_p2, %p2037_p3  ;;  %p2059_p4 = scmp.lt.s32.totalorder %s2057_s8, %s2050_s13 }
  0x32   : > { %p2054_p11 = pneg %p2053_p5  ;;  %p2060_p7 = por %p2059_p4, %p2058_p9 }
  0x34   : > { %p2061_p10 = pnand %p2060_p7, %p2054_p11 }
  0x36   : > { %2064 = shalt.err (!%p2061_p10)
}
  0x37   : > { %s2182_s30 = smov 64   ;;  %s2183_s14 = smov 4  }
  0x38   : > { %1899 = dma.hbm_to_vmem [thread:$0]  (!%p2301_p0), %s2295_s18, 128, %s2297_s20, %s2306_s28, %s2182_s30, %s2182_s30, %s2183_s14  }
  0x39   : > { %p306_p12 = scmp.lt.s32.totalorder %s2179_s26, 3  ;;  %p2728_p1 = scmp.ge.s32.totalorder %s2179_s26, 1 }
  0x3b   : > { %p307_p3 = pnand %p2728_p1, %p306_p12 }
  0x3c   : > { %s2338_s7 = sand.u32 (!%p307_p3), 1, %s2163_s22  }
  0x3d   : > { %310 = sbr.rel (%p307_p3) target bundleno = 5826 (0x16c2), region = 36  ;;  %s2341_s15 = sshll.u32 (!%p307_p3), %s2338_s7, 3 }
  0x3e   : > { %s313_s16 = scalar_lea.sflag (!%p307_p3), [#allocation6], %s2338_s7  ;;  %s316_s13 = scalar_lea.vmem (!%p307_p3), [#allocation5], %s2341_s15 }
  0x44   : > { %2146 = dma.done.wait (%p2273_p8), %s313_s16, 128  }
  0x45   : > { %2148 = vsyncadd (%p2273_p8), %s313_s16, 4294967168  ;;  %p394_p9 = scmp.lt.s32.totalorder %s2171_s24, 1  ;;  %vm425_vm0 = vcmask 261120   ;;  %v2184_v0 = vmov 0.0   ;;  %vm2185_vm1 = vmmov 0   ;;  %v1964_v1 = vld [vmem:[%s316_s13] sm:$0xff]  }
  0x46   : > { %1826 = vmatprep.subr.bf16.mxu1 %v2184_v0  ;;  %1830 = vmatprep.mubr.msk.bf16.mxu1 %vm2185_vm1, %v2184_v0  ;;  %426 = vst.msk [vmem:[#allocation3] sm:$0xff] %vm425_vm0, %v2184_v0  ;;  %427 = vst.msk [vmem:[#allocation4] sm:$0xff] %vm425_vm0, %v2184_v0  ;;  %vm471_vm2 = vcmask 130048   ;;  %s2729_s0 = sld [smem:[#allocation14_spill]]  ;;  %s2730_s2 = sld [smem:[#allocation16_spill]]  ;;  %vm673_vm3 = vcmask 257024  }
  0x47   : > { %s2358_s18 = scalar_select %p394_p9, %s2171_s24, 1  ;;  %1816 = vmatprep.subr.bf16.mxu0 %v1964_v1 }
  0x48   : > { %1817 = vmatpush3.bf16.msra.mxu0 %v1964_v1  ;;  %s2731_s3 = sld [smem:[#allocation17_spill]]  ;;  %s561_s17 = smul.u32 56, %s2171_s24 }
  0x49   : > { %s1760_s9 = sshll.u32 %s2358_s18, 4  ;;  %1842 = vmatprep.subr.bf16.mxu0 %v2184_v0  ;;  %s2186_s8 = smov 64  }
  0x4a   : > { %s562_s19 = scalar_lea.vmem [#allocation2], %s561_s17  ;;  %s2188_s14 = smov 96  }
  0x4b   : > { %s1782_s16 = smul.u32 40, %s2171_s24  ;;  %s2712_s27 = sshll.u32 %s2171_s24, 3 }
  0x4c   : > { %v1965_v2 = vld [vmem:[%s2729_s0] sm:$0xff]   ;;  %v1966_v3 = vld [vmem:[%s2729_s0 + $0x8] sm:$0xff]   ;;  %s398_s30 = scalar_lea.vmem %s2730_s2, %s1760_s9  ;;  %v1967_v4 = vld [vmem:[%s2729_s0 + $0x10] sm:$0xff]   ;;  %s2713_s9 = smul.u32 24, %s2171_s24 }
  0x4d   : > { %1818 = vmatprep.mubr.msk.bf16.mxu0 %vm471_vm2, %v1965_v2  ;;  %v2375_v5 = vld [vmem:[%s398_s30] sm:$0xff]   ;;  %v2380_v6 = vld [vmem:[%s398_s30 + $0x8] sm:$0xff]   ;;  %v1968_v8 = vld [vmem:[%s2729_s0 + $0x18] sm:$0xff]   ;;  %s2714_s30 = smov 32   ;;  %s1545_s13 = scalar_lea.vmem [#allocation2], %s1782_s16 }
  0x4e   : > { %1819 = vmatmul.mubr.msk.bf16.vlgmr.msra.gmra.mrb[0].mxu0 %vm471_vm2, %v1966_v3  ;;  %1827 = vmatpush3.bf16.msra.mxu1 %v2375_v5  ;;  %v564_v7 = vld [vmem:[#allocation3] sm:$0xff]  ;;  %s401_s28 = scalar_lea.vmem %s2731_s3, %s2358_s18  ;;  %v630_v34 = vld [vmem:[#allocation4] sm:$0xff]  ;;  %s1551_s20 = scalar_lea.vmem [#allocation2], %s2713_s9 }
  0x4f   : > { %1822 = vmatprep.mubr.msk.bf16.mxu0 %vm471_vm2, %v1967_v4  ;;  %1828 = vmatprep.subr.bf16.mxu1 %v2184_v0  ;;  %v565_v9 = vpack.c.bf16 %v564_v7, %v564_v7  ;;  %v1690_v10 = vld [vmem:[%s401_s28] ss:$0 sm:$0xff]  ;;  %s1556_s28 = scalar_lea.vmem [#allocation2], %s2712_s27  ;;  %s2732_s4 = sld [smem:[#allocation18_spill]] }
  0x50   : > { %1843 = vmatpush3.bf16.msra.mxu0 %v2375_v5  ;;  %s2716_s1 = sshll.u32 %s2171_s24, 7  ;;  %p2735_p11 = scmp.ne.s32.totalorder %s2724_s10, 0 }
  0x51   : > { %1844 = vmatprep.subr.bf16.mxu0 %v2184_v0 }
  0x52   : > { %1829 = vmatpush3.bf16.msra.mxu1 %v2380_v6 }
  0x53   : > { %1834 = vmatprep.subr.bf16.mxu1 %v2184_v0 }
  0x54   : > { %1845 = vmatpush3.bf16.msra.mxu0 %v2380_v6 }
  0x55   : > { %1858 = vmatprep.subr.bf16.mxu0 %v2184_v0  ;;  %1831 = vmatmul.mubr.msk.bf16.vlgmr.msra.gmra.mrb[0].mxu1 %vm425_vm0, %v565_v9 }
  0x56   : > { %1823 = vmatmul.mubr.msk.bf16.gmra.mrb[4].mxu0 %vm471_vm2, %v1968_v8  ;;  %1835 = vmatpush3.bf16.msra.mxu1 %v2375_v5 }
  0x57   : > { %1838 = vmatprep.mubr.msk.bf16.mxu1 %vm2185_vm1, %v2184_v0  ;;  %1836 = vmatprep.subr.bf16.mxu1 %v2184_v0 }
  0x58   : > { %1846 = vmatprep.mubr.msk.bf16.mxu0 %vm2185_vm1, %v2184_v0 }
  0x5a   : > { %1837 = vmatpush3.bf16.msra.mxu1 %v2380_v6 }
  0x5b   : > { %1850 = vmatprep.subr.bf16.mxu1 %v2184_v0 }
 0x121   : > { %v1820_v11 = vpop.f32.mrb[0].mxu0 }
 0x122   : > { %v527_v12 = vadd.f32 %v1820_v11, %v1690_v10  ;;  %v518_v13 = vpop.f32.mrb[1].mxu0 }
 0x123   : > { %v519_v14 = vadd.f32 %v1690_v10, %v518_v13  ;;  %v1821_v15 = vpop.f32.mrb[2].mxu0 }
 0x124   : > { %551 = vst [vmem:[#allocation2 + $0x10] sm:$0xff] %v527_v12  ;;  %v530_v16 = vadd.f32 %v1821_v15, %v1690_v10  ;;  %v521_v17 = vpop.f32.mrb[3].mxu0 }
 0x125   : > { %549 = vst [vmem:[#allocation2] sm:$0xff] %v519_v14  ;;  %v522_v18 = vadd.f32 %v1690_v10, %v521_v17 }
 0x126   : > { %552 = vst [vmem:[#allocation2 + $0x18] sm:$0xff] %v530_v16 }
 0x127   : > { %550 = vst [vmem:[#allocation2 + $0x8] sm:$0xff] %v522_v18 }
 0x128   : > { %v616_v20 = vpop.f32.mrb[0].mxu1 }
 0x129   : > { %v1824_v19 = vpop.f32.mrb[4].mxu0  ;;  %v1832_v23 = vpop.f32.mrb[1].mxu1 }
 0x12a   : > { %v543_v21 = vadd.f32 %v1824_v19, %v1690_v10  ;;  %v534_v22 = vpop.f32.mrb[5].mxu0  ;;  %v619_v26 = vpop.f32.mrb[2].mxu1 }
 0x12b   : > { %v535_v24 = vadd.f32 %v1690_v10, %v534_v22  ;;  %v1825_v25 = vpop.f32.mrb[6].mxu0  ;;  %v1833_v29 = vpop.f32.mrb[3].mxu1 }
 0x12c   : > { %555 = vst [vmem:[#allocation2 + $0x30] sm:$0xff] %v543_v21  ;;  %v546_v27 = vadd.f32 %v1825_v25, %v1690_v10  ;;  %v537_v28 = vpop.f32.mrb[7].mxu0 }
 0x12d   : > { %553 = vst [vmem:[#allocation2 + $0x20] sm:$0xff] %v535_v24  ;;  %v538_v30 = vadd.f32 %v1690_v10, %v537_v28 }
 0x12e   : > { %556 = vst [vmem:[#allocation2 + $0x38] sm:$0xff] %v546_v27 }
 0x12f   : > { %554 = vst [vmem:[#allocation2 + $0x28] sm:$0xff] %v538_v30 }
 0x136   : > { %v563_v31 = vld [vmem:[%s562_s19] sm:$0xff]  ;;  %v1708_v53 = vld [vmem:[%s1545_s13 + $0x8] sm:$0xff]  ;;  %v1715_v17 = vld [vmem:[%s1551_s20 + $0x10] sm:$0xff]  ;;  %s980_s19 = ssub.s32 4, %s2171_s24 }
 0x137   : > { %v622_v32 = vadd.f32 %v616_v20, %v563_v31  ;;  %s2491_s13 = sshll.u32 %s980_s19, 3 }
 0x138   : > { %s982_s20 = scalar_lea.vmem [#allocation2], %s2491_s13 }
 0x139   : > { %1971 = vtanh.f32 %v622_v32  ;;  %v1703_v35 = vmul.f32 -1.442695, %v622_v32 }
 0x13b   : > { %1973 = vpow2.f32 %v1703_v35 }
 0x143   : > { %v1972_v33 = vpop.eup %1971 }
 0x144   : > { %637 = vrot.lane.b32.xlu0 %v1972_v33, %s2186_s8 }
 0x145   : > { %v1974_v36 = vpop.eup %1973 }
 0x146   : > { %v626_v37 = vadd.f32 1.0, %v1974_v36 }
 0x148   : > { %632 = vrot.lane.b32.xlu0 %v630_v34, %s2714_s30  ;;  %1975 = vrcp.f32 %v626_v37 }
 0x152   : > { %v1976_v38 = vpop.eup %1975 }
 0x1b6   : > { %v638_v39 = vpop.permute.xlu0 %637 }
 0x1b7   : > { %v640_v40 = vmul.f32 %v1976_v38, %v638_v39 }
 0x1b9   : > { %642 = vrot.lane.b32.xlu1 %v640_v40, %s2714_s30 }
 0x1ba   : > { %v633_v41 = vpop.permute.xlu0 %632 }
 0x1bb   : > { %v635_v42 = vmul.f32 %v1976_v38, %v633_v41 }
 0x22b   : > { %v643_v43 = vpop.permute.xlu1 %642 }
 0x22c   : > { %v645_v44 = vadd.f32 %v643_v43, %v635_v42  ;;  %v1722_v42 = vld [vmem:[%s1556_s28 + $0x18] sm:$0xff]  ;;  %s2711_s28 = smul.u32 4294967272, %s2171_s24 }
 0x22e   : > { %1977 = vtanh.f32 %v645_v44  ;;  %s1566_s19 = scalar_lea.vmem [#allocation2], %s2711_s28 }
 0x238   : > { %v1978_v45 = vpop.eup %1977 }
 0x239   : > { %648 = vrot.lane.b32.xlu1 %v1978_v45, %s2186_s8 }
 0x23d   : > { %653 = vrot.lane.b32.xlu1 %v645_v44, %s2188_s14 }
 0x2ab   : > { %v649_v46 = vpop.permute.xlu1 %648 }
 0x2ac   : > { %v2414_v47 = vmul.f32 %v1976_v38, %v649_v46 }
 0x2ae   : > { %658 = vrot.lane.b32.xlu0 %v2414_v47, %s2714_s30 }
 0x2af   : > { %v654_v48 = vpop.permute.xlu1 %653 }
 0x2b0   : > { %656 = vst.msk [vmem:[#allocation4] sm:$0xff] %vm425_vm0, %v654_v48 }
 0x2b7   : > { %v733_v49 = vld [vmem:[#allocation4] sm:$0xff] }
 0x2b8   : > { %735 = vrot.lane.b32.xlu1 %v733_v49, %s2714_s30 }
 0x320   : > { %v659_v50 = vpop.permute.xlu0 %658 }
 0x321   : > { %661 = vst.msk [vmem:[#allocation3] sm:$0xff] %vm425_vm0, %v659_v50 }
 0x328   : > { %v680_v51 = vld [vmem:[#allocation3] sm:$0xff] }
 0x329   : > { %v681_v52 = vpack.c.bf16 %v680_v51, %v680_v51 }
 0x32a   : > { %v736_v3 = vpop.permute.xlu1 %735 }
 0x32b   : > { %1839 = vmatmul.mubr.msk.bf16.vlgmr.msra.gmra.mrb[4].mxu1 %vm425_vm0, %v681_v52 }
 0x32c   : > { %1851 = vmatpush3.bf16.msra.mxu1 %v2375_v5  ;;  %1854 = vmatprep.mubr.msk.bf16.mxu1 %vm2185_vm1, %v2184_v0 }
 0x32d   : > { %1852 = vmatprep.subr.bf16.mxu1 %v2184_v0 }
 0x330   : > { %1853 = vmatpush3.bf16.msra.mxu1 %v2380_v6 }
 0x331   : > { %1866 = vmatprep.subr.bf16.mxu1 %v2184_v0 }
 0x3fe   : > { %v719_v54 = vpop.f32.mrb[4].mxu1 }
 0x3ff   : > { %v725_v55 = vadd.f32 %v1708_v53, %v719_v54  ;;  %v1840_v56 = vpop.f32.mrb[5].mxu1 }
 0x400   : > { %v722_v57 = vpop.f32.mrb[6].mxu1 }
 0x401   : > { %1979 = vtanh.f32 %v725_v55  ;;  %v1841_v58 = vpop.f32.mrb[7].mxu1  ;;  %v1710_v60 = vmul.f32 -1.442695, %v725_v55 }
 0x403   : > { %1981 = vpow2.f32 %v1710_v60 }
 0x40b   : > { %v1980_v59 = vpop.eup %1979 }
 0x40c   : > { %740 = vrot.lane.b32.xlu0 %v1980_v59, %s2186_s8 }
 0x40d   : > { %v1982_v61 = vpop.eup %1981 }
 0x40e   : > { %v729_v62 = vadd.f32 1.0, %v1982_v61 }
 0x410   : > { %1983 = vrcp.f32 %v729_v62 }
 0x41a   : > { %v1984_v63 = vpop.eup %1983 }
 0x41b   : > { %v738_v4 = vmul.f32 %v1984_v63, %v736_v3 }
 0x47e   : > { %v741_v1 = vpop.permute.xlu0 %740 }
 0x47f   : > { %v743_v2 = vmul.f32 %v1984_v63, %v741_v1 }
 0x481   : > { %745 = vrot.lane.b32.xlu0 %v743_v2, %s2714_s30 }
 0x4f3   : > { %v746_v7 = vpop.permute.xlu0 %745 }
 0x4f4   : > { %v748_v8 = vadd.f32 %v746_v7, %v738_v4  ;;  %v983_v7 = vld [vmem:[%s982_s20] sm:$0xff]  ;;  %s2709_s20 = smul.u32 4294967256, %s2171_s24 }
 0x4f6   : > { %1985 = vtanh.f32 %v748_v8 }
 0x500   : > { %v1986_v9 = vpop.eup %1985 }
 0x501   : > { %751 = vrot.lane.b32.xlu1 %v1986_v9, %s2186_s8 }
 0x505   : > { %756 = vrot.lane.b32.xlu1 %v748_v8, %s2188_s14 }
 0x573   : > { %v752_v10 = vpop.permute.xlu1 %751 }
 0x574   : > { %v2435_v11 = vmul.f32 %v1984_v63, %v752_v10 }
 0x576   : > { %761 = vrot.lane.b32.xlu0 %v2435_v11, %s2714_s30 }
 0x577   : > { %v757_v12 = vpop.permute.xlu1 %756 }
 0x578   : > { %759 = vst.msk [vmem:[#allocation4] sm:$0xff] %vm425_vm0, %v757_v12 }
 0x57f   : > { %v835_v13 = vld [vmem:[#allocation4] sm:$0xff] }
 0x580   : > { %837 = vrot.lane.b32.xlu1 %v835_v13, %s2714_s30 }
 0x5e8   : > { %v762_v14 = vpop.permute.xlu0 %761 }
 0x5e9   : > { %764 = vst.msk [vmem:[#allocation3] sm:$0xff] %vm425_vm0, %v762_v14 }
 0x5f0   : > { %v782_v15 = vld [vmem:[#allocation3] sm:$0xff] }
 0x5f1   : > { %v783_v16 = vpack.c.bf16 %v782_v15, %v782_v15 }
 0x5f2   : > { %v838_v30 = vpop.permute.xlu1 %837 }
 0x5f3   : > { %1847 = vmatmul.mubr.msk.bf16.vlgmr.msra.gmra.mrb[8].mxu0 %vm425_vm0, %v783_v16 }
 0x5f4   : > { %1859 = vmatpush3.bf16.msra.mxu0 %v2375_v5  ;;  %1862 = vmatprep.mubr.msk.bf16.mxu0 %vm2185_vm1, %v2184_v0 }
 0x5f5   : > { %1860 = vmatprep.subr.bf16.mxu0 %v2184_v0 }
 0x5f8   : > { %1861 = vmatpush3.bf16.msra.mxu0 %v2380_v6 }
 0x5f9   : > { %1874 = vmatprep.subr.bf16.mxu0 %v2184_v0 }
 0x6c6   : > { %v821_v18 = vpop.f32.mrb[8].mxu0 }
 0x6c7   : > { %v827_v19 = vadd.f32 %v1715_v17, %v821_v18  ;;  %v1848_v20 = vpop.f32.mrb[9].mxu0 }
 0x6c8   : > { %v824_v21 = vpop.f32.mrb[10].mxu0 }
 0x6c9   : > { %1987 = vtanh.f32 %v827_v19  ;;  %v1849_v22 = vpop.f32.mrb[11].mxu0  ;;  %v1717_v24 = vmul.f32 -1.442695, %v827_v19 }
 0x6cb   : > { %1989 = vpow2.f32 %v1717_v24 }
 0x6d3   : > { %v1988_v23 = vpop.eup %1987 }
 0x6d4   : > { %842 = vrot.lane.b32.xlu0 %v1988_v23, %s2186_s8 }
 0x6d5   : > { %v1990_v25 = vpop.eup %1989 }
 0x6d6   : > { %v831_v26 = vadd.f32 1.0, %v1990_v25 }
 0x6d8   : > { %1991 = vrcp.f32 %v831_v26 }
 0x6e2   : > { %v1992_v27 = vpop.eup %1991 }
 0x6e3   : > { %v840_v31 = vmul.f32 %v1992_v27, %v838_v30 }
 0x746   : > { %v843_v28 = vpop.permute.xlu0 %842 }
 0x747   : > { %v845_v29 = vmul.f32 %v1992_v27, %v843_v28 }
 0x749   : > { %847 = vrot.lane.b32.xlu0 %v845_v29, %s2714_s30 }
 0x7bb   : > { %v848_v32 = vpop.permute.xlu0 %847 }
 0x7bc   : > { %v850_v33 = vadd.f32 %v848_v32, %v840_v31 }
 0x7be   : > { %1993 = vtanh.f32 %v850_v33 }
 0x7c8   : > { %v1994_v34 = vpop.eup %1993 }
 0x7c9   : > { %853 = vrot.lane.b32.xlu1 %v1994_v34, %s2186_s8 }
 0x7cd   : > { %858 = vrot.lane.b32.xlu1 %v850_v33, %s2188_s14  ;;  %v1734_v33 = vld [vmem:[%s1566_s19 + $0x28] sm:$0xff]  ;;  %s1572_s19 = scalar_lea.vmem [#allocation2], %s2709_s20 }
 0x83b   : > { %v854_v35 = vpop.permute.xlu1 %853 }
 0x83c   : > { %v2456_v36 = vmul.f32 %v1992_v27, %v854_v35 }
 0x83e   : > { %863 = vrot.lane.b32.xlu0 %v2456_v36, %s2714_s30 }
 0x83f   : > { %v859_v37 = vpop.permute.xlu1 %858 }
 0x840   : > { %861 = vst.msk [vmem:[#allocation4] sm:$0xff] %vm425_vm0, %v859_v37 }
 0x847   : > { %v936_v38 = vld [vmem:[#allocation4] sm:$0xff] }
 0x848   : > { %938 = vrot.lane.b32.xlu1 %v936_v38, %s2714_s30 }
 0x8b0   : > { %v864_v39 = vpop.permute.xlu0 %863 }
 0x8b1   : > { %866 = vst.msk [vmem:[#allocation3] sm:$0xff] %vm425_vm0, %v864_v39 }
 0x8b8   : > { %v883_v40 = vld [vmem:[#allocation3] sm:$0xff] }
 0x8b9   : > { %v884_v41 = vpack.c.bf16 %v883_v40, %v883_v40 }
 0x8ba   : > { %v939_v56 = vpop.permute.xlu1 %938 }
 0x8bb   : > { %1855 = vmatmul.mubr.msk.bf16.vlgmr.msra.gmra.mrb[8].mxu1 %vm425_vm0, %v884_v41 }
 0x8bc   : > { %1867 = vmatpush3.bf16.msra.mxu1 %v2375_v5  ;;  %1870 = vmatprep.mubr.msk.bf16.mxu1 %vm2185_vm1, %v2184_v0 }
 0x8bd   : > { %1868 = vmatprep.subr.bf16.mxu1 %v2184_v0 }
 0x8c0   : > { %1869 = vmatpush3.bf16.msra.mxu1 %v2380_v6 }
 0x8c1   : > { %1882 = vmatprep.subr.bf16.mxu1 %v2184_v0 }
 0x98e   : > { %v922_v43 = vpop.f32.mrb[8].mxu1 }
 0x98f   : > { %v928_v44 = vadd.f32 %v1722_v42, %v922_v43  ;;  %v1856_v45 = vpop.f32.mrb[9].mxu1 }
 0x990   : > { %v925_v46 = vpop.f32.mrb[10].mxu1 }
 0x991   : > { %1995 = vtanh.f32 %v928_v44  ;;  %v1857_v48 = vpop.f32.mrb[11].mxu1  ;;  %v1724_v50 = vmul.f32 -1.442695, %v928_v44 }
 0x993   : > { %1997 = vpow2.f32 %v1724_v50 }
 0x99b   : > { %v1996_v49 = vpop.eup %1995 }
 0x99c   : > { %943 = vrot.lane.b32.xlu0 %v1996_v49, %s2186_s8 }
 0x99d   : > { %v1998_v51 = vpop.eup %1997 }
 0x99e   : > { %v932_v52 = vadd.f32 1.0, %v1998_v51 }
 0x9a0   : > { %1999 = vrcp.f32 %v932_v52 }
 0x9aa   : > { %v2000_v53 = vpop.eup %1999 }
 0x9ab   : > { %v941_v57 = vmul.f32 %v2000_v53, %v939_v56 }
 0xa0e   : > { %v944_v54 = vpop.permute.xlu0 %943 }
 0xa0f   : > { %v946_v55 = vmul.f32 %v2000_v53, %v944_v54 }
 0xa11   : > { %948 = vrot.lane.b32.xlu0 %v946_v55, %s2714_s30 }
 0xa83   : > { %v949_v58 = vpop.permute.xlu0 %948 }
 0xa84   : > { %v951_v59 = vadd.f32 %v949_v58, %v941_v57  ;;  %v1741_v57 = vld [vmem:[%s1572_s19 + $0x30] sm:$0xff]  ;;  %s2710_s19 = smul.u32 4294967240, %s2171_s24 }
 0xa86   : > { %2001 = vtanh.f32 %v951_v59  ;;  %s1578_s20 = scalar_lea.vmem [#allocation2], %s2710_s19 }
 0xa90   : > { %v2002_v60 = vpop.eup %2001 }
 0xa91   : > { %954 = vrot.lane.b32.xlu1 %v2002_v60, %s2186_s8 }
 0xa95   : > { %959 = vrot.lane.b32.xlu1 %v951_v59, %s2188_s14 }
 0xb03   : > { %v955_v61 = vpop.permute.xlu1 %954 }
 0xb04   : > { %v2477_v62 = vmul.f32 %v2000_v53, %v955_v61 }
 0xb06   : > { %964 = vrot.lane.b32.xlu0 %v2477_v62, %s2714_s30 }
 0xb07   : > { %v960_v63 = vpop.permute.xlu1 %959 }
 0xb08   : > { %962 = vst.msk [vmem:[#allocation4] sm:$0xff] %vm425_vm0, %v960_v63 }
 0xb0f   : > { %v1037_v1 = vld [vmem:[#allocation4] sm:$0xff] }
 0xb10   : > { %1039 = vrot.lane.b32.xlu1 %v1037_v1, %s2714_s30 }
 0xb78   : > { %v965_v2 = vpop.permute.xlu0 %964 }
 0xb79   : > { %967 = vst.msk [vmem:[#allocation3] sm:$0xff] %vm425_vm0, %v965_v2 }
 0xb80   : > { %v984_v3 = vld [vmem:[#allocation3] sm:$0xff] }
 0xb81   : > { %v985_v4 = vpack.c.bf16 %v984_v3, %v984_v3 }
 0xb82   : > { %v1040_v21 = vpop.permute.xlu1 %1039 }
 0xb83   : > { %1863 = vmatmul.mubr.msk.bf16.vlgmr.msra.gmra.mrb[12].mxu0 %vm425_vm0, %v985_v4 }
 0xb84   : > { %1875 = vmatpush3.bf16.msra.mxu0 %v2375_v5  ;;  %1878 = vmatprep.mubr.msk.bf16.mxu0 %vm2185_vm1, %v2184_v0 }
 0xb85   : > { %1876 = vmatprep.subr.bf16.mxu0 %v2184_v0 }
 0xb88   : > { %1877 = vmatpush3.bf16.msra.mxu0 %v2380_v6 }
 0xc56   : > { %v1023_v8 = vpop.f32.mrb[12].mxu0 }
 0xc57   : > { %v1029_v9 = vadd.f32 %v1023_v8, %v983_v7  ;;  %v1864_v10 = vpop.f32.mrb[13].mxu0 }
 0xc58   : > { %v1026_v12 = vpop.f32.mrb[14].mxu0 }
 0xc59   : > { %2003 = vtanh.f32 %v1029_v9  ;;  %v1865_v13 = vpop.f32.mrb[15].mxu0  ;;  %v1729_v15 = vmul.f32 -1.442695, %v1029_v9 }
 0xc5b   : > { %2005 = vpow2.f32 %v1729_v15 }
 0xc63   : > { %v2004_v14 = vpop.eup %2003 }
 0xc64   : > { %1044 = vrot.lane.b32.xlu0 %v2004_v14, %s2186_s8 }
 0xc65   : > { %v2006_v16 = vpop.eup %2005 }
 0xc66   : > { %v1033_v17 = vadd.f32 1.0, %v2006_v16 }
 0xc68   : > { %2007 = vrcp.f32 %v1033_v17 }
 0xc72   : > { %v2008_v18 = vpop.eup %2007 }
 0xc73   : > { %v1042_v22 = vmul.f32 %v2008_v18, %v1040_v21 }
 0xcd6   : > { %v1045_v19 = vpop.permute.xlu0 %1044 }
 0xcd7   : > { %v1047_v20 = vmul.f32 %v2008_v18, %v1045_v19 }
 0xcd9   : > { %1049 = vrot.lane.b32.xlu0 %v1047_v20, %s2714_s30 }
 0xd4b   : > { %v1050_v23 = vpop.permute.xlu0 %1049 }
 0xd4c   : > { %v1052_v24 = vadd.f32 %v1050_v23, %v1042_v22  ;;  %v1748_v23 = vld [vmem:[%s1578_s20 + $0x38] sm:$0xff]  ;;  %s669_s20 = sshra.s32 %s561_s17, 3  ;;  %s2733_s17 = smul.u32 24, %s2171_s24 }
 0xd4e   : > { %2009 = vtanh.f32 %v1052_v24 }
 0xd58   : > { %v2010_v25 = vpop.eup %2009 }
 0xd59   : > { %1055 = vrot.lane.b32.xlu1 %v2010_v25, %s2186_s8 }
 0xd5d   : > { %1060 = vrot.lane.b32.xlu1 %v1052_v24, %s2188_s14 }
 0xdcb   : > { %v1056_v26 = vpop.permute.xlu1 %1055 }
 0xdcc   : > { %v2498_v27 = vmul.f32 %v2008_v18, %v1056_v26 }
 0xdce   : > { %1065 = vrot.lane.b32.xlu0 %v2498_v27, %s2714_s30 }
 0xdcf   : > { %v1061_v28 = vpop.permute.xlu1 %1060 }
 0xdd0   : > { %1063 = vst.msk [vmem:[#allocation4] sm:$0xff] %vm425_vm0, %v1061_v28 }
 0xdd7   : > { %v1139_v29 = vld [vmem:[#allocation4] sm:$0xff] }
 0xdd8   : > { %1141 = vrot.lane.b32.xlu1 %v1139_v29, %s2714_s30 }
 0xe40   : > { %v1066_v30 = vpop.permute.xlu0 %1065 }
 0xe41   : > { %1068 = vst.msk [vmem:[#allocation3] sm:$0xff] %vm425_vm0, %v1066_v30 }
 0xe48   : > { %v1086_v31 = vld [vmem:[#allocation3] sm:$0xff] }
 0xe49   : > { %v1087_v32 = vpack.c.bf16 %v1086_v31, %v1086_v31 }
 0xe4a   : > { %v1142_v44 = vpop.permute.xlu1 %1141 }
 0xe4b   : > { %1871 = vmatmul.mubr.msk.bf16.vlgmr.msra.gmra.mrb[12].mxu1 %vm425_vm0, %v1087_v32 }
 0xe4c   : > { %1883 = vmatpush3.bf16.msra.mxu1 %v2375_v5  ;;  %1886 = vmatprep.mubr.msk.bf16.mxu1 %vm2185_vm1, %v2184_v0 }
 0xe4d   : > { %1884 = vmatprep.subr.bf16.mxu1 %v2184_v0 }
 0xe50   : > { %1885 = vmatpush3.bf16.msra.mxu1 %v2380_v6 }
 0xf1e   : > { %v1125_v34 = vpop.f32.mrb[12].mxu1 }
 0xf1f   : > { %v1131_v35 = vadd.f32 %v1734_v33, %v1125_v34  ;;  %v1872_v37 = vpop.f32.mrb[13].mxu1 }
 0xf20   : > { %v1128_v38 = vpop.f32.mrb[14].mxu1 }
 0xf21   : > { %2011 = vtanh.f32 %v1131_v35  ;;  %v1873_v39 = vpop.f32.mrb[15].mxu1  ;;  %v1736_v5 = vmul.f32 -1.442695, %v1131_v35 }
 0xf23   : > { %2013 = vpow2.f32 %v1736_v5 }
 0xf2b   : > { %v2012_v40 = vpop.eup %2011 }
 0xf2c   : > { %1146 = vrot.lane.b32.xlu0 %v2012_v40, %s2186_s8 }
 0xf2d   : > { %v2014_v41 = vpop.eup %2013 }
 0xf2e   : > { %v1135_v42 = vadd.f32 1.0, %v2014_v41  ;;  %v1762_v41 = vpack.c.bf16 %v2414_v47, %v2414_v47  ;;  %v1765_v47 = vpack.c.bf16 %v2435_v11, %v2435_v11 }
 0xf30   : > { %2015 = vrcp.f32 %v1135_v42  ;;  %v1768_v42 = vpack.c.bf16 %v2456_v36, %v2456_v36 }
 0xf3a   : > { %v2016_v0 = vpop.eup %2015 }
 0xf3b   : > { %v1144_v45 = vmul.f32 %v2016_v0, %v1142_v44 }
 0xf9e   : > { %v1147_v6 = vpop.permute.xlu0 %1146 }
 0xf9f   : > { %v1149_v43 = vmul.f32 %v2016_v0, %v1147_v6  ;;  %v1772_v6 = vpack.c.bf16 %v2498_v27, %v2498_v27 }
 0xfa1   : > { %1151 = vrot.lane.b32.xlu0 %v1149_v43, %s2714_s30 }
0x1013   : > { %v1152_v46 = vpop.permute.xlu0 %1151 }
0x1014   : > { %v1154_v48 = vadd.f32 %v1152_v46, %v1144_v45 }
0x1016   : > { %2017 = vtanh.f32 %v1154_v48 }
0x1020   : > { %v2018_v49 = vpop.eup %2017 }
0x1021   : > { %1157 = vrot.lane.b32.xlu1 %v2018_v49, %s2186_s8 }
0x1025   : > { %1162 = vrot.lane.b32.xlu1 %v1154_v48, %s2188_s14  ;;  %v1771_v48 = vpack.c.bf16 %v2477_v62, %v2477_v62 }
0x1093   : > { %v1158_v50 = vpop.permute.xlu1 %1157 }
0x1094   : > { %v2518_v51 = vmul.f32 %v2016_v0, %v1158_v50 }
0x1096   : > { %1167 = vrot.lane.b32.xlu0 %v2518_v51, %s2714_s30 }
0x1097   : > { %v1163_v52 = vpop.permute.xlu1 %1162 }
0x1098   : > { %1165 = vst.msk [vmem:[#allocation4] sm:$0xff] %vm425_vm0, %v1163_v52 }
0x109f   : > { %v1241_v53 = vld [vmem:[#allocation4] sm:$0xff] }
0x10a0   : > { %1243 = vrot.lane.b32.xlu1 %v1241_v53, %s2714_s30 }
0x1108   : > { %v1168_v54 = vpop.permute.xlu0 %1167 }
0x1109   : > { %1170 = vst.msk [vmem:[#allocation3] sm:$0xff] %vm425_vm0, %v1168_v54 }
0x1110   : > { %v1188_v55 = vld [vmem:[#allocation3] sm:$0xff] }
0x1111   : > { %v1189_v56 = vpack.c.bf16 %v1188_v55, %v1188_v55 }
0x1112   : > { %v1244_v10 = vpop.permute.xlu1 %1243 }
0x1113   : > { %1879 = vmatmul.mubr.msk.bf16.vlgmr.msra.gmra.mrb[16].mxu0 %vm425_vm0, %v1189_v56 }
0x11e6   : > { %v1227_v58 = vpop.f32.mrb[16].mxu0 }
0x11e7   : > { %v1233_v59 = vadd.f32 %v1741_v57, %v1227_v58  ;;  %v1880_v60 = vpop.f32.mrb[17].mxu0 }
0x11e8   : > { %v1230_v61 = vpop.f32.mrb[18].mxu0 }
0x11e9   : > { %2019 = vtanh.f32 %v1233_v59  ;;  %v1881_v63 = vpop.f32.mrb[19].mxu0  ;;  %v1743_v2 = vmul.f32 -1.442695, %v1233_v59 }
0x11eb   : > { %2021 = vpow2.f32 %v1743_v2 }
0x11f3   : > { %v2020_v1 = vpop.eup %2019 }
0x11f4   : > { %1248 = vrot.lane.b32.xlu0 %v2020_v1, %s2186_s8 }
0x11f5   : > { %v2022_v3 = vpop.eup %2021 }
0x11f6   : > { %v1237_v4 = vadd.f32 1.0, %v2022_v3 }
0x11f8   : > { %2023 = vrcp.f32 %v1237_v4 }
0x1202   : > { %v2024_v7 = vpop.eup %2023 }
0x1203   : > { %v1246_v12 = vmul.f32 %v2024_v7, %v1244_v10 }
0x1266   : > { %v1249_v8 = vpop.permute.xlu0 %1248 }
0x1267   : > { %v1251_v9 = vmul.f32 %v2024_v7, %v1249_v8 }
0x1269   : > { %1253 = vrot.lane.b32.xlu0 %v1251_v9, %s2714_s30 }
0x12db   : > { %v1254_v13 = vpop.permute.xlu0 %1253 }
0x12dc   : > { %v1256_v14 = vadd.f32 %v1254_v13, %v1246_v12 }
0x12de   : > { %2025 = vtanh.f32 %v1256_v14 }
0x12e8   : > { %v2026_v15 = vpop.eup %2025 }
0x12e9   : > { %1259 = vrot.lane.b32.xlu1 %v2026_v15, %s2186_s8 }
0x12ed   : > { %1264 = vrot.lane.b32.xlu1 %v1256_v14, %s2188_s14 }
0x135b   : > { %v1260_v16 = vpop.permute.xlu1 %1259 }
0x135c   : > { %v1262_v17 = vmul.f32 %v2024_v7, %v1260_v16 }
0x135e   : > { %1269 = vrot.lane.b32.xlu0 %v1262_v17, %s2714_s30  ;;  %v1778_v43 = vpack.c.bf16 %v1262_v17, %v1262_v17 }
0x135f   : > { %v1265_v18 = vpop.permute.xlu1 %1264 }
0x1360   : > { %1267 = vst.msk [vmem:[#allocation4] sm:$0xff] %vm425_vm0, %v1265_v18 }
0x1367   : > { %v1343_v19 = vld [vmem:[#allocation4] sm:$0xff] }
0x1368   : > { %1345 = vrot.lane.b32.xlu1 %v1343_v19, %s2714_s30 }
0x13d0   : > { %v1270_v20 = vpop.permute.xlu0 %1269 }
0x13d1   : > { %1272 = vst.msk [vmem:[#allocation3] sm:$0xff] %vm425_vm0, %v1270_v20 }
0x13d8   : > { %v1290_v21 = vld [vmem:[#allocation3] sm:$0xff] }
0x13d9   : > { %v1291_v22 = vpack.c.bf16 %v1290_v21, %v1290_v21 }
0x13da   : > { %v1346_v38 = vpop.permute.xlu1 %1345 }
0x13db   : > { %1887 = vmatmul.mubr.msk.bf16.vlgmr.msra.gmra.mrb[16].mxu1 %vm425_vm0, %v1291_v22 }
0x14ae   : > { %v1329_v24 = vpop.f32.mrb[16].mxu1 }
0x14af   : > { %v1335_v25 = vadd.f32 %v1748_v23, %v1329_v24  ;;  %v1888_v26 = vpop.f32.mrb[17].mxu1 }
0x14b0   : > { %v1332_v28 = vpop.f32.mrb[18].mxu1 }
0x14b1   : > { %2027 = vtanh.f32 %v1335_v25  ;;  %v1889_v29 = vpop.f32.mrb[19].mxu1  ;;  %v1750_v31 = vmul.f32 -1.442695, %v1335_v25 }
0x14b3   : > { %2029 = vpow2.f32 %v1750_v31 }
0x14bb   : > { %v2028_v30 = vpop.eup %2027 }
0x14bc   : > { %1350 = vrot.lane.b32.xlu0 %v2028_v30, %s2186_s8 }
0x14bd   : > { %v2030_v32 = vpop.eup %2029 }
0x14be   : > { %v1339_v33 = vadd.f32 1.0, %v2030_v32 }
0x14c0   : > { %2031 = vrcp.f32 %v1339_v33 }
0x14ca   : > { %v2032_v34 = vpop.eup %2031 }
0x14cb   : > { %v1348_v39 = vmul.f32 %v2032_v34, %v1346_v38 }
0x152e   : > { %v1351_v35 = vpop.permute.xlu0 %1350 }
0x152f   : > { %v1353_v37 = vmul.f32 %v2032_v34, %v1351_v35 }
0x1531   : > { %1355 = vrot.lane.b32.xlu0 %v1353_v37, %s2714_s30 }
0x15a3   : > { %v1356_v40 = vpop.permute.xlu0 %1355 }
0x15a4   : > { %v1358_v5 = vadd.f32 %v1356_v40, %v1348_v39 }
0x15a6   : > { %2033 = vtanh.f32 %v1358_v5  ;;  %1366 = vrot.lane.b32.xlu0 %v1358_v5, %s2188_s14  ;;  %s1761_s14 = sshll.u32 %s2358_s18, 5  ;;  %s1764_s18 = sadd.s32 8, %s1782_s16 }
0x15a7   : > { %s2564_s27 = scalar_lea.vmem %s2732_s4, %s1761_s14  ;;  %s772_s28 = sshra.s32 %s1764_s18, 3 }
0x15a8   : > { %s379_s14 = scalar_lea.vmem [#allocation9], %s2341_s15  ;;  %s2734_s16 = smov 32  }
0x15aa   : > { %666 = vrot.lane.b32.xlu0 %v1762_v41, %s2714_s30 }
0x15ae   : > { %871 = vrot.lane.b32.xlu0 %v1768_v42, %s2714_s30 }
0x15b0   : > { %v2034_v0 = vpop.eup %2033 }
0x15b1   : > { %1361 = vrot.lane.b32.xlu1 %v2034_v0, %s2186_s8  ;;  %s1705_s8 = sshll.u32 %s669_s20, 2  ;;  %s1712_s20 = sshll.u32 %s772_s28, 2 }
0x15b2   : > { %1073 = vrot.lane.b32.xlu0 %v1772_v6, %s2714_s30  ;;  %s672_s9 = scalar_lea.vmem %s2564_s27, %s1705_s8  ;;  %s775_s0 = scalar_lea.vmem %s2564_s27, %s1712_s20 }
0x15b3   : > { %s1447_s28 = sshll.u32 %s379_s14, 4  ;;  %s2590_s28 = int_to_ptr.vmem [resolvable:$true] %s1447_s28 }
0x15b4   : > { %s2065_s20 = scalar_lea.vmem %s2590_s28, 128 }
0x15b5   : > { %769 = vrot.lane.b32.xlu1 %v1765_v47, %s2714_s30  ;;  %p2066_p8 = scmp.ne.s32.totalorder %s2590_s28, %s2065_s20 }
0x15b6   : > { %1277 = vrot.lane.b32.xlu0 %v1778_v43, %s2714_s30  ;;  %s1767_s30 = sadd.s32 16, %s2733_s17  ;;  %s2587_s17 = scalar_lea.hbm %s2707_s6, %s2716_s1 }
0x15b7   : > { %s874_s19 = sshra.s32 %s1767_s30, 3  ;;  %p2067_p0 = pnand %p2066_p8, %p2735_p11 }
0x15b8   : > { %s1719_s8 = sshll.u32 %s874_s19, 2  ;;  %s1413_s19 = scalar_lea.sflag [#allocation10], %s2338_s7 }
0x15b9   : > { %p2068_p6 = pneg %p2067_p0 }
0x1618   : > { %v1367_v36 = vpop.permute.xlu0 %1366 }
0x1619   : > { %1369 = vst.msk [vmem:[#allocation4] sm:$0xff] %vm425_vm0, %v1367_v36 }
0x161c   : > { %v667_v11 = vpop.permute.xlu0 %666 }
0x161d   : > { %674 = vst.msk [vmem:[%s672_s9] sm:$0xf] %vm673_vm3, %v667_v11  ;;  %s877_s9 = scalar_lea.vmem %s2564_s27, %s1719_s8 }
0x1620   : > { %v1392_v27 = vld [vmem:[#allocation4] sm:$0xff]  ;;  %v872_v49 = vpop.permute.xlu0 %871 }
0x1621   : > { %1393 = vst.msk [vmem:[%s379_s14] sm:$0xff] %vm425_vm0, %v1392_v27 }
0x1623   : > { %v1362_v44 = vpop.permute.xlu1 %1361 }
0x1624   : > { %v1364_v45 = vmul.f32 %v2032_v34, %v1362_v44 }
0x1626   : > { %1371 = vrot.lane.b32.xlu1 %v1364_v45, %s2734_s16 }
0x1627   : > { %v770_v46 = vpop.permute.xlu1 %769 }
0x1628   : > { %776 = vst.msk [vmem:[%s775_s0] sm:$0xf] %vm673_vm3, %v770_v46  ;;  %s2189_s0 = smov [#allocation9]  }
0x1629   : > { %878 = vst.msk [vmem:[%s877_s9] sm:$0xf] %vm673_vm3, %v872_v49  ;;  %s2069_s8 = sshll.u32 %s2189_s0, 4  ;;  %s2070_s8 = int_to_ptr.vmem [resolvable:$false] %s2069_s8 }
0x162a   : > { %972 = vrot.lane.b32.xlu1 %v1771_v48, %s2734_s16  ;;  %s2071_s30 = scalar_lea.vmem %s2070_s8, 256  ;;  %p2072_p13 = scmp.lt.s32.totalorder %s2590_s28, %s2070_s8 }
0x162b   : > { %p2073_p2 = scmp.lt.s32.totalorder %s2071_s30, %s2065_s20 }
0x162d   : > { %p2074_p5 = por %p2073_p2, %p2072_p13 }
0x162f   : > { %p2075_p4 = pnand %p2074_p5, %p2068_p6 }
0x1631   : > { %2078 = shalt.err (!%p2075_p4)
}
0x1632   : > { %s2079_s14 = scalar_lea.hbm %s2587_s17, 128  ;;  %s2083_s0 = scalar_lea.hbm %s2707_s6, 256 }
0x1633   : > { %p2080_p7 = scmp.ne.s32.totalorder %s2587_s17, %s2079_s14  ;;  %p2084_p1 = scmp.lt.u32.totalorder %s2587_s17, %s2707_s6 }
0x1634   : > { %p2085_p3 = scmp.lt.u32.totalorder %s2083_s0, %s2079_s14  ;;  %p2087_p8 = scmp.lt.u32.totalorder %s2079_s14, %s2587_s17 }
0x1635   : > { %p2081_p10 = pnand %p2080_p7, %p2735_p11 }
0x1636   : > { %p2086_p9 = por %p2085_p3, %p2084_p1 }
0x1637   : > { %p2082_p12 = pneg %p2081_p10 }
0x1638   : > { %p2088_p0 = por %p2087_p8, %p2086_p9 }
0x163a   : > { %p2089_p6 = pnand %p2088_p0, %p2082_p12 }
0x163c   : > { %2092 = shalt.err (!%p2089_p6)
}
0x163d   : > { %1893 = dma.vmem_to_hbm [thread:$0]  (%p2735_p11), %s2590_s28, 128, %s2587_s17, %s1413_s19   ;;  %v1775_v62 = vpack.c.bf16 %v2518_v51, %v2518_v51  ;;  %v1781_v50 = vpack.c.bf16 %v1364_v45, %v1364_v45  ;;  %v1074_v52 = vpop.permute.xlu0 %1073 }
0x163e   : > { %s2736_s1 = sshll.u32 %s2171_s24, 3  ;;  %s2737_s30 = smul.u32 4294967272, %s2171_s24 }
0x163f   : > { %1175 = vrot.lane.b32.xlu1 %v1775_v62, %s2734_s16  ;;  %s1770_s20 = sadd.s32 24, %s2736_s1  ;;  %s2738_s9 = smul.u32 4294967256, %s2171_s24 }
0x1640   : > { %s1774_s14 = sadd.s32 40, %s2737_s30  ;;  %s975_s0 = sshra.s32 %s1770_s20, 3 }
0x1641   : > { %s1777_s18 = sadd.s32 48, %s2738_s9  ;;  %s1076_s8 = sshra.s32 %s2491_s13, 3  ;;  %v1278_v56 = vpop.permute.xlu0 %1277 }
0x1642   : > { %s1178_s17 = sshra.s32 %s1774_s14, 3  ;;  %s1280_s28 = sshra.s32 %s1777_s18, 3 }
0x1643   : > { %1379 = vrot.lane.b32.xlu1 %v1781_v50, %s2734_s16  ;;  %s2739_s19 = smul.u32 4294967240, %s2171_s24  ;;  %s1726_s3 = sshll.u32 %s975_s0, 2 }
0x1644   : > { %s1731_s4 = sshll.u32 %s1076_s8, 2  ;;  %s1738_s16 = sshll.u32 %s1178_s17, 2 }
0x1645   : > { %s1780_s2 = sadd.s32 56, %s2739_s19  ;;  %s1745_s1 = sshll.u32 %s1280_s28, 2 }
0x1646   : > { %s1382_s30 = sshra.s32 %s1780_s2, 3  ;;  %s978_s9 = scalar_lea.vmem %s2564_s27, %s1726_s3 }
0x1647   : > { %s1079_s20 = scalar_lea.vmem %s2564_s27, %s1731_s4  ;;  %s372_s13 = scalar_lea.vmem [#allocation8], %s2341_s15 }
0x1648   : > { %s1434_s14 = sshll.u32 %s372_s13, 4  ;;  %s2632_s18 = sshll.u32 %s1382_s30, 2  ;;  %s2645_s14 = int_to_ptr.vmem [resolvable:$true] %s1434_s14 }
0x1649   : > { %s1181_s0 = scalar_lea.vmem %s2564_s27, %s1738_s16  ;;  %s1283_s8 = scalar_lea.vmem %s2564_s27, %s1745_s1 }
0x164a   : > { %s2740_s17 = sshll.u32 %s2171_s24, 7  ;;  %s1385_s4 = scalar_lea.vmem %s2564_s27, %s2632_s18 }
0x164b   : > { %s2643_s3 = scalar_lea.hbm %s2706_s5, %s2740_s17  ;;  %s1408_s24 = scalar_lea.sflag [#allocation7], %s2338_s7 }
0x164c   : > { %s2093_s15 = scalar_lea.vmem %s2645_s14, 128  ;;  %s2190_s19 = smov [#allocation8]  }
0x164d   : > { %p2094_p13 = scmp.ne.s32.totalorder %s2645_s14, %s2093_s15  ;;  %s2097_s16 = sshll.u32 %s2190_s19, 4  ;;  %s2098_s16 = int_to_ptr.vmem [resolvable:$false] %s2097_s16 }
0x164e   : > { %s2099_s1 = scalar_lea.vmem %s2098_s16, 256  ;;  %p2100_p4 = scmp.lt.s32.totalorder %s2645_s14, %s2098_s16 }
0x164f   : > { %p2095_p2 = pnand %p2094_p13, %p2735_p11  ;;  %p2101_p7 = scmp.lt.s32.totalorder %s2099_s1, %s2093_s15 }
0x1651   : > { %p2096_p5 = pneg %p2095_p2  ;;  %p2102_p10 = por %p2101_p7, %p2100_p4 }
0x1653   : > { %p2103_p12 = pnand %p2102_p10, %p2096_p5 }
0x1698   : > { %v1372_v51 = vpop.permute.xlu1 %1371 }
0x1699   : > { %1374 = vst.msk [vmem:[#allocation3] sm:$0xff] %vm425_vm0, %v1372_v51 }
0x169c   : > { %v973_v53 = vpop.permute.xlu1 %972 }
0x169d   : > { %979 = vst.msk [vmem:[%s978_s9] sm:$0xf] %vm673_vm3, %v973_v53 }
0x169e   : > { %1080 = vst.msk [vmem:[%s1079_s20] sm:$0xf] %vm673_vm3, %v1074_v52 }
0x16a0   : > { %v1390_v55 = vld [vmem:[#allocation3] sm:$0xff] }
0x16a1   : > { %1391 = vst.msk [vmem:[%s372_s13] sm:$0xff] %vm425_vm0, %v1390_v55 }
0x16b1   : > { %v1176_v54 = vpop.permute.xlu1 %1175 }
0x16b2   : > { %1182 = vst.msk [vmem:[%s1181_s0] sm:$0xf] %vm673_vm3, %v1176_v54 }
0x16b3   : > { %1284 = vst.msk [vmem:[%s1283_s8] sm:$0xf] %vm673_vm3, %v1278_v56 }
0x16b4   : > { %2106 = shalt.err (!%p2103_p12)
}
0x16b5   : > { %s2107_s7 = scalar_lea.hbm %s2643_s3, 128  ;;  %s2111_s20 = scalar_lea.hbm %s2706_s5, 256 }
0x16b6   : > { %p2108_p1 = scmp.ne.s32.totalorder %s2643_s3, %s2107_s7  ;;  %p2112_p8 = scmp.lt.u32.totalorder %s2643_s3, %s2706_s5 }
0x16b7   : > { %p2113_p0 = scmp.lt.u32.totalorder %s2111_s20, %s2107_s7  ;;  %p2115_p13 = scmp.lt.u32.totalorder %s2107_s7, %s2643_s3 }
0x16b8   : > { %p2109_p3 = pnand %p2108_p1, %p2735_p11 }
0x16b9   : > { %p2114_p6 = por %p2113_p0, %p2112_p8 }
0x16ba   : > { %p2110_p9 = pneg %p2109_p3 }
0x16bb   : > { %p2116_p2 = por %p2115_p13, %p2114_p6 }
0x16bd   : > { %p2117_p5 = pnand %p2116_p2, %p2110_p9 }
0x16bf   : > { %2120 = shalt.err (!%p2117_p5)
}
0x16c0   : > { %1892 = dma.vmem_to_hbm [thread:$0]  (%p2735_p11), %s2645_s14, 128, %s2643_s3, %s1408_s24   ;;  %v1380_v57 = vpop.permute.xlu1 %1379 }
0x16c1   : > { %1386 = vst.msk [vmem:[%s1385_s4] sm:$0xf] %vm673_vm3, %v1380_v57 }
0x16c2 PF: > { %s1475_s8 = sand.u32 1, %s2159_s21   ;;  %p2741_p4 = scmp.ne.s32.totalorder %s2725_s12, 0 }
0x16c3   : > { %p2742_p7 = scmp.ge.s32.totalorder %s2179_s26, 2  ;;  %s1476_s17 = scalar_lea.sflag [#allocation7], %s1475_s8 }
0x16c5   : > { %p1901_p10 = pnand %p2742_p7, %p2741_p4 }
0x16c7   : > { %2150 = dma.done.wait (!%p1901_p10), %s1476_s17, 128  }
0x16c8   : > { %2152 = vsyncadd (!%p1901_p10), %s1476_s17, 4294967168  ;;  %s1485_s10 = scalar_lea.sflag [#allocation10], %s1475_s8 }
0x16c9   : > { %2154 = dma.done.wait (!%p1901_p10), %s1485_s10, 128  }
0x16ca   : > { %2156 = vsyncadd (!%p1901_p10), %s1485_s10, 4294967168  ;;  %s26_s26 = sadd.s32 1, %s2179_s26   ;;  %s2743_s21 = smov %s2163_s22 }
0x16cb   : > { %p23_p11 = scmp.ge.s32.totalorder %s26_s26, 4   ;;  %s2744_s22 = smov %s2167_s23 }
0x16cc   : > { %s2745_s23 = smov %s2282_s11  ;;  %s2746_s24 = smov %s2175_s25 }
0x16cd   : > { %s2747_s25 = smov %s2749_s29  ;;  %25 = sbr.rel (!%p23_p11) target bundleno = 14 (0xe), region = 143 }
0x16d4   :  { %1490 = vsyncpa [#allocation6], 1 }
0x16d5   :  { %1492 = vsyncpa [#allocation6 + $0x1], 1 }
0x16d6   :  { %1493 = vsyncpa [#allocation7], 1 }
0x16d7   :  { %1495 = vsyncpa [#allocation7 + $0x1], 1 }
0x16d8   :  { %1496 = vsyncpa [#allocation10], 1 }
0x16d9   :  { %1498 = vsyncpa [#allocation10 + $0x1], 1 }

</bundles_post_ra>
